<compile_context>
chip_gen: v7x
topology: tpu7x:2x2x1
jax: 0.10.0
libtpu: 0.0.40
codegen_flags: <defaults>
</compile_context>

<pallas_src>
import jax
import jax.numpy as jnp
from jax.experimental import pallas as pl
from jax.experimental.pallas import tpu as pltpu


def _round_up(x, m):
    return ((x + m - 1) // m) * m


# ---------------------------------------------------------------------------
# Pallas kernels
# ---------------------------------------------------------------------------
def _conv_relu_pool_kernel(x_ref, w_ref, b_ref, o_ref):
    """Fused conv-as-matmul + bias + ReLU + 2x2 max-pool epilogue.

    x_ref: (4, tile_p, K) bf16 -- axis 0 indexes the 2x2 pooling-window corner,
           rows are pooled output positions (n, hp, wp), K = kh*kw*Cin features.
    w_ref: (K, Cout) bf16.   b_ref: (1, Cout) f32.   o_ref: (tile_p, Cout) f32.
    """
    w = w_ref[...]
    c0 = jnp.dot(x_ref[0], w, preferred_element_type=jnp.float32)
    c1 = jnp.dot(x_ref[1], w, preferred_element_type=jnp.float32)
    c2 = jnp.dot(x_ref[2], w, preferred_element_type=jnp.float32)
    c3 = jnp.dot(x_ref[3], w, preferred_element_type=jnp.float32)
    # Shared bias + monotonic ReLU commute with the window max.
    m = jnp.maximum(jnp.maximum(c0, c1), jnp.maximum(c2, c3))
    o_ref[...] = jnp.maximum(m + b_ref[...], 0.0)


def _fc_stack_kernel(x_ref, w1_ref, b1_ref, w2_ref, b2_ref, w3_ref, b3_ref, o_ref):
    """fc1 -> ReLU -> fc2 -> ReLU -> fc3, all weights resident in VMEM."""
    h = x_ref[...]
    h = jnp.maximum(
        jnp.dot(h, w1_ref[...], preferred_element_type=jnp.float32) + b1_ref[...], 0.0)
    h = jnp.maximum(
        jnp.dot(h, w2_ref[...], preferred_element_type=jnp.float32) + b2_ref[...], 0.0)
    o_ref[...] = (
        jnp.dot(h, w3_ref[...], preferred_element_type=jnp.float32) + b3_ref[...])


# ---------------------------------------------------------------------------
# Glue + wrappers
# ---------------------------------------------------------------------------
def _im2col_pool_groups(x_nhwc, kh, kw):
    """(N,H,W,C) -> (4, P, K) patches.

    Axis 0 = pooling-window corner (di*2 + dj), rows ordered (n, hp, wp) over the
    P = N*(Ho//2)*(Wo//2) pooled output positions, features ordered (i, j, c) to
    match the (KH, KW, Cin, Cout) weight flattening.
    """
    N, H, W, C = x_nhwc.shape
    Ho, Wo = H - kh + 1, W - kw + 1
    Hp, Wp = Ho // 2, Wo // 2
    K = kh * kw * C
    cols = [x_nhwc[:, i:i + Ho, j:j + Wo, :] for i in range(kh) for j in range(kw)]
    pat = jnp.concatenate(cols, axis=-1)                 # (N, Ho, Wo, K)
    if Ho != 2 * Hp or Wo != 2 * Wp:
        pat = pat[:, :2 * Hp, :2 * Wp, :]
    pat = pat.reshape(N, Hp, 2, Wp, 2, K)
    pat = jnp.transpose(pat, (2, 4, 0, 1, 3, 5))         # (di, dj, N, Hp, Wp, K)
    return pat.reshape(4, N * Hp * Wp, K), (N, Hp, Wp)


def conv_relu_pool(x_nhwc, w_mat, b_row, *, kh=5, kw=5, tile_p=512):
    """Valid (no-pad, stride-1) conv + bias + ReLU + 2x2/2 max-pool, fused.

    w_mat: (kh*kw*Cin, Cout) bf16 (prepacked), b_row: (1, Cout) f32.
    Returns (N, Hp, Wp, Cout) f32.
    """
    patches, (N, Hp, Wp) = _im2col_pool_groups(x_nhwc.astype(jnp.bfloat16), kh, kw)
    _, P, K = patches.shape
    Cout = w_mat.shape[1]

    # Tile the pooled-row axis; at tiny batch this collapses to one full-array
    # block (exempt from the (8/16,128) tiling rule), at larger batch it becomes
    # a pipelined, megacore-parallel grid.  512 rows * K * bf16 stays far below
    # even v7x's 64 MiB VMEM with double buffering.
    tile_p = min(tile_p, _round_up(P, 8))
    P_pad = _round_up(P, tile_p)
    if P_pad != P:
        patches = jnp.pad(patches, ((0, 0), (0, P_pad - P), (0, 0)))

    out = pl.pallas_call(
        _conv_relu_pool_kernel,
        out_shape=jax.ShapeDtypeStruct((P_pad, Cout), jnp.float32),
        grid=(P_pad // tile_p,),
        in_specs=[
            pl.BlockSpec((4, tile_p, K), lambda p: (0, p, 0)),
            pl.BlockSpec((K, Cout), lambda p: (0, 0)),
            pl.BlockSpec((1, Cout), lambda p: (0, 0)),
        ],
        out_specs=pl.BlockSpec((tile_p, Cout), lambda p: (p, 0)),
        compiler_params=pltpu.CompilerParams(
            dimension_semantics=("parallel",)),
    )(patches, w_mat, b_row)

    if P_pad != P:
        out = out[:P]
    return out.reshape(N, Hp, Wp, Cout)


def fc_stack(h, packed):
    """Single fused pallas_call for fc1+ReLU, fc2+ReLU, fc3."""
    N = h.shape[0]
    n_out = packed["fc3_w"].shape[1]
    return pl.pallas_call(
        _fc_stack_kernel,
        out_shape=jax.ShapeDtypeStruct((N, n_out), jnp.float32),
    )(h, packed["fc1_w"], packed["fc1_b"],
      packed["fc2_w"], packed["fc2_b"],
      packed["fc3_w"], packed["fc3_b"])


def simple_cnn_forward(x_nchw, packed):
    x = jnp.transpose(x_nchw, (0, 2, 3, 1)).astype(jnp.float32)    # NCHW -> NHWC
    x = conv_relu_pool(x, packed["conv1_w"], packed["conv1_b"])    # (N, 14, 14, 6)
    x = conv_relu_pool(x, packed["conv2_w"], packed["conv2_b"])    # (N, 5, 5, 16)
    N = x.shape[0]
    h = x.reshape(N, 5 * 5 * 16)   # NHWC flatten; fc1 rows were permuted to match
    return fc_stack(h, packed)


# ---------------------------------------------------------------------------
# Params: torch-style init + one-time prepack (hoisted out of the forward path)
# ---------------------------------------------------------------------------
def init_params(key):
    """Deterministic synthetic params with PyTorch default-init-like shapes."""
    ks = jax.random.split(key, 10)

    def u(k, shape, fan_in):
        bound = 1.0 / (fan_in ** 0.5)
        return jax.random.uniform(k, shape, jnp.float32, -bound, bound)

    return {
        "conv1_w": u(ks[0], (6, 3, 5, 5), 3 * 25),
        "conv1_b": u(ks[1], (6,), 3 * 25),
        "conv2_w": u(ks[2], (16, 6, 5, 5), 6 * 25),
        "conv2_b": u(ks[3], (16,), 6 * 25),
        "fc1_w": u(ks[4], (120, 400), 400),
        "fc1_b": u(ks[5], (120,), 400),
        "fc2_w": u(ks[6], (84, 120), 120),
        "fc2_b": u(ks[7], (84,), 120),
        "fc3_w": u(ks[8], (10, 84), 84),
        "fc3_b": u(ks[9], (10,), 84),
    }


def prepack_params(p):
    """One-time repack (outside jit) of torch-layout params into kernel layout."""
    def conv_w(w):  # (Cout, Cin, KH, KW) -> (KH*KW*Cin, Cout), bf16 for the MXU
        co, ci, kh, kw = w.shape
        return (jnp.transpose(w, (2, 3, 1, 0))
                .reshape(kh * kw * ci, co).astype(jnp.bfloat16))

    # torch flattens NCHW as (c, h, w); our pooled activation flattens NHWC as
    # (h, w, c).  Permute fc1's input rows once so the forward needs no transpose.
    fc1 = p["fc1_w"].reshape(120, 16, 5, 5)                      # (out, c, h, w)
    fc1 = jnp.transpose(fc1, (2, 3, 1, 0)).reshape(400, 120)     # rows: h*80+w*16+c

    return {
        "conv1_w": conv_w(p["conv1_w"]),
        "conv1_b": p["conv1_b"].reshape(1, -1).astype(jnp.float32),
        "conv2_w": conv_w(p["conv2_w"]),
        "conv2_b": p["conv2_b"].reshape(1, -1).astype(jnp.float32),
        "fc1_w": fc1.astype(jnp.float32),
        "fc1_b": p["fc1_b"].reshape(1, -1).astype(jnp.float32),
        "fc2_w": p["fc2_w"].T.astype(jnp.float32),
        "fc2_b": p["fc2_b"].reshape(1, -1).astype(jnp.float32),
        "fc3_w": p["fc3_w"].T.astype(jnp.float32),
        "fc3_b": p["fc3_b"].reshape(1, -1).astype(jnp.float32),
    }


# ---------------------------------------------------------------------------
# Pure-JAX reference (torch semantics) for a loose-tolerance sanity check
# ---------------------------------------------------------------------------
def _reference_forward(x_nchw, params):
    x = jnp.transpose(x_nchw, (0, 2, 3, 1)).astype(jnp.float32)

    def conv(x, w, b):
        y = jax.lax.conv_general_dilated(
            x, jnp.transpose(w, (2, 3, 1, 0)), (1, 1), "VALID",
            dimension_numbers=("NHWC", "HWIO", "NHWC"))
        return jax.nn.relu(y + b)

    def pool(x):
        return jax.lax.reduce_window(x, -jnp.inf, jax.lax.max,
                                     (1, 2, 2, 1), (1, 2, 2, 1), "VALID")

    x = pool(conv(x, params["conv1_w"], params["conv1_b"]))
    x = pool(conv(x, params["conv2_w"], params["conv2_b"]))
    x = jnp.transpose(x, (0, 3, 1, 2)).reshape(x.shape[0], -1)     # torch view(-1,400)
    x = jax.nn.relu(x @ params["fc1_w"].T + params["fc1_b"])
    x = jax.nn.relu(x @ params["fc2_w"].T + params["fc2_b"])
    return x @ params["fc3_w"].T + params["fc3_b"]


if __name__ == "__main__":
    key = jax.random.PRNGKey(0)
    pkey, xkey = jax.random.split(key)
    params = init_params(pkey)
    packed = prepack_params(params)              # hoisted: done once, outside jit

    # CIFAR-10 geometry is required by the 16*5*5 flatten: small batch of 2.
    x = jax.random.normal(xkey, (2, 3, 32, 32), dtype=jnp.float32)

    fwd = jax.jit(simple_cnn_forward)
    out = jax.block_until_ready(fwd(x, packed))
    assert out.shape == (2, 10), out.shape

    ref = jax.block_until_ready(_reference_forward(x, params))
    # bf16 MXU inputs in the conv layers -> allow ~1e-2-scale deviation.
    assert bool(jnp.allclose(out, ref, rtol=1e-1, atol=1e-1)), (out, ref)

    print("KERNEL_OK")
</pallas_src>

<mosaic_0001>
module attributes {stable_mosaic.version = 11 : i64} {
  func.func @_conv_relu_pool_kernel(%arg0: i32, %arg1: memref<4x392x75xbf16, #tpu.memory_space<vmem>>, %arg2: memref<75x6xbf16, #tpu.memory_space<vmem>>, %arg3: memref<1x6xf32, #tpu.memory_space<vmem>>, %arg4: memref<392x6xf32, #tpu.memory_space<vmem>>) attributes {dimension_semantics = [#tpu.dimension_semantics<parallel>], iteration_bounds = array<i64: 1>, scalar_prefetch = 0 : i64, scratch_operands = 0 : i64, tpu.core_type = #tpu.core_type<tc>, window_params = [{transform_indices = @transform_0, window_bounds = array<i64: 4, 392, 75>}, {pipeline_mode = #tpu.pipeline_mode<synchronous>, transform_indices = @transform_1, window_bounds = array<i64: 75, 6>}, {pipeline_mode = #tpu.pipeline_mode<synchronous>, transform_indices = @transform_2, window_bounds = array<i64: 1, 6>}, {transform_indices = @transform_3, window_bounds = array<i64: 392, 6>}]} {
    %c0 = arith.constant 0 : index
    %c0_0 = arith.constant 0 : index
    %0 = vector.load %arg2[%c0, %c0_0] : memref<75x6xbf16, #tpu.memory_space<vmem>>, vector<75x6xbf16>
    %c0_1 = arith.constant 0 : index
    %c0_2 = arith.constant 0 : index
    %c0_3 = arith.constant 0 : index
    %1 = vector.load %arg1[%c0_1, %c0_2, %c0_3] : memref<4x392x75xbf16, #tpu.memory_space<vmem>>, vector<1x392x75xbf16>
    %2 = vector.shape_cast %1 : vector<1x392x75xbf16> to vector<392x75xbf16>
    %cst = arith.constant dense<0.000000e+00> : vector<392x6xf32>
    %3 = tpu.matmul %2, %0, %cst {dimension_numbers = #tpu.dot_dimension_numbers<[1], [0], [0], [1], [0, 0, 1, 1], [], []>} : vector<392x75xbf16>, vector<75x6xbf16>, vector<392x6xf32> -> vector<392x6xf32>
    %c1 = arith.constant 1 : index
    %c0_4 = arith.constant 0 : index
    %c0_5 = arith.constant 0 : index
    %4 = vector.load %arg1[%c1, %c0_4, %c0_5] : memref<4x392x75xbf16, #tpu.memory_space<vmem>>, vector<1x392x75xbf16>
    %5 = vector.shape_cast %4 : vector<1x392x75xbf16> to vector<392x75xbf16>
    %cst_6 = arith.constant dense<0.000000e+00> : vector<392x6xf32>
    %6 = tpu.matmul %5, %0, %cst_6 {dimension_numbers = #tpu.dot_dimension_numbers<[1], [0], [0], [1], [0, 0, 1, 1], [], []>} : vector<392x75xbf16>, vector<75x6xbf16>, vector<392x6xf32> -> vector<392x6xf32>
    %c2 = arith.constant 2 : index
    %c0_7 = arith.constant 0 : index
    %c0_8 = arith.constant 0 : index
    %7 = vector.load %arg1[%c2, %c0_7, %c0_8] : memref<4x392x75xbf16, #tpu.memory_space<vmem>>, vector<1x392x75xbf16>
    %8 = vector.shape_cast %7 : vector<1x392x75xbf16> to vector<392x75xbf16>
    %cst_9 = arith.constant dense<0.000000e+00> : vector<392x6xf32>
    %9 = tpu.matmul %8, %0, %cst_9 {dimension_numbers = #tpu.dot_dimension_numbers<[1], [0], [0], [1], [0, 0, 1, 1], [], []>} : vector<392x75xbf16>, vector<75x6xbf16>, vector<392x6xf32> -> vector<392x6xf32>
    %c3 = arith.constant 3 : index
    %c0_10 = arith.constant 0 : index
    %c0_11 = arith.constant 0 : index
    %10 = vector.load %arg1[%c3, %c0_10, %c0_11] : memref<4x392x75xbf16, #tpu.memory_space<vmem>>, vector<1x392x75xbf16>
    %11 = vector.shape_cast %10 : vector<1x392x75xbf16> to vector<392x75xbf16>
    %cst_12 = arith.constant dense<0.000000e+00> : vector<392x6xf32>
    %12 = tpu.matmul %11, %0, %cst_12 {dimension_numbers = #tpu.dot_dimension_numbers<[1], [0], [0], [1], [0, 0, 1, 1], [], []>} : vector<392x75xbf16>, vector<75x6xbf16>, vector<392x6xf32> -> vector<392x6xf32>
    %13 = arith.maximumf %3, %6 : vector<392x6xf32>
    %14 = arith.maximumf %9, %12 : vector<392x6xf32>
    %15 = arith.maximumf %13, %14 : vector<392x6xf32>
    %c0_13 = arith.constant 0 : index
    %c0_14 = arith.constant 0 : index
    %16 = vector.load %arg3[%c0_13, %c0_14] : memref<1x6xf32, #tpu.memory_space<vmem>>, vector<1x6xf32>
    %17 = vector.broadcast %16 : vector<1x6xf32> to vector<392x6xf32>
    %18 = arith.addf %15, %17 : vector<392x6xf32>
    %cst_15 = arith.constant 0.000000e+00 : f32
    %19 = vector.broadcast %cst_15 : f32 to vector<392x6xf32>
    %20 = arith.maximumf %18, %19 : vector<392x6xf32>
    %c0_16 = arith.constant 0 : index
    %c0_17 = arith.constant 0 : index
    %21 = vector.load %arg4[%c0_16, %c0_17] : memref<392x6xf32, #tpu.memory_space<vmem>>, vector<392x6xf32>
    tpu.vector_store %arg4[%c0_16, %c0_17], %20 {strides = array<i32>} : memref<392x6xf32, #tpu.memory_space<vmem>>, vector<392x6xf32>,
    return
  }
  func.func @transform_0(%arg0: i32) -> (i32, i32, i32) {
    %c0_i32 = arith.constant 0 : i32
    %c0_i32_0 = arith.constant 0 : i32
    %c0_i32_1 = arith.constant 0 : i32
    return %c0_i32, %arg0, %c0_i32_0 : i32, i32, i32
  }
  func.func @transform_1(%arg0: i32) -> (i32, i32) {
    %c0_i32 = arith.constant 0 : i32
    %c0_i32_0 = arith.constant 0 : i32
    %c0_i32_1 = arith.constant 0 : i32
    return %c0_i32, %c0_i32_0 : i32, i32
  }
  func.func @transform_2(%arg0: i32) -> (i32, i32) {
    %c0_i32 = arith.constant 0 : i32
    %c0_i32_0 = arith.constant 0 : i32
    %c0_i32_1 = arith.constant 0 : i32
    return %c0_i32, %c0_i32_0 : i32, i32
  }
  func.func @transform_3(%arg0: i32) -> (i32, i32) {
    %c0_i32 = arith.constant 0 : i32
    %c0_i32_0 = arith.constant 0 : i32
    return %arg0, %c0_i32 : i32, i32
  }
}

module attributes {stable_mosaic.version = 11 : i64} {
  func.func @_conv_relu_pool_kernel(%arg0: i32, %arg1: memref<4x56x150xbf16, #tpu.memory_space<vmem>>, %arg2: memref<150x16xbf16, #tpu.memory_space<vmem>>, %arg3: memref<1x16xf32, #tpu.memory_space<vmem>>, %arg4: memref<56x16xf32, #tpu.memory_space<vmem>>) attributes {dimension_semantics = [#tpu.dimension_semantics<parallel>], iteration_bounds = array<i64: 1>, scalar_prefetch = 0 : i64, scratch_operands = 0 : i64, tpu.core_type = #tpu.core_type<tc>, window_params = [{transform_indices = @transform_0, window_bounds = array<i64: 4, 56, 150>}, {pipeline_mode = #tpu.pipeline_mode<synchronous>, transform_indices = @transform_1, window_bounds = array<i64: 150, 16>}, {pipeline_mode = #tpu.pipeline_mode<synchronous>, transform_indices = @transform_2, window_bounds = array<i64: 1, 16>}, {transform_indices = @transform_3, window_bounds = array<i64: 56, 16>}]} {
    %c0 = arith.constant 0 : index
    %c0_0 = arith.constant 0 : index
    %0 = vector.load %arg2[%c0, %c0_0] : memref<150x16xbf16, #tpu.memory_space<vmem>>, vector<150x16xbf16>
    %c0_1 = arith.constant 0 : index
    %c0_2 = arith.constant 0 : index
    %c0_3 = arith.constant 0 : index
    %1 = vector.load %arg1[%c0_1, %c0_2, %c0_3] : memref<4x56x150xbf16, #tpu.memory_space<vmem>>, vector<1x56x150xbf16>
    %2 = vector.shape_cast %1 : vector<1x56x150xbf16> to vector<56x150xbf16>
    %cst = arith.constant dense<0.000000e+00> : vector<56x16xf32>
    %3 = tpu.matmul %2, %0, %cst {dimension_numbers = #tpu.dot_dimension_numbers<[1], [0], [0], [1], [0, 0, 1, 1], [], []>} : vector<56x150xbf16>, vector<150x16xbf16>, vector<56x16xf32> -> vector<56x16xf32>
    %c1 = arith.constant 1 : index
    %c0_4 = arith.constant 0 : index
    %c0_5 = arith.constant 0 : index
    %4 = vector.load %arg1[%c1, %c0_4, %c0_5] : memref<4x56x150xbf16, #tpu.memory_space<vmem>>, vector<1x56x150xbf16>
    %5 = vector.shape_cast %4 : vector<1x56x150xbf16> to vector<56x150xbf16>
    %cst_6 = arith.constant dense<0.000000e+00> : vector<56x16xf32>
    %6 = tpu.matmul %5, %0, %cst_6 {dimension_numbers = #tpu.dot_dimension_numbers<[1], [0], [0], [1], [0, 0, 1, 1], [], []>} : vector<56x150xbf16>, vector<150x16xbf16>, vector<56x16xf32> -> vector<56x16xf32>
    %c2 = arith.constant 2 : index
    %c0_7 = arith.constant 0 : index
    %c0_8 = arith.constant 0 : index
    %7 = vector.load %arg1[%c2, %c0_7, %c0_8] : memref<4x56x150xbf16, #tpu.memory_space<vmem>>, vector<1x56x150xbf16>
    %8 = vector.shape_cast %7 : vector<1x56x150xbf16> to vector<56x150xbf16>
    %cst_9 = arith.constant dense<0.000000e+00> : vector<56x16xf32>
    %9 = tpu.matmul %8, %0, %cst_9 {dimension_numbers = #tpu.dot_dimension_numbers<[1], [0], [0], [1], [0, 0, 1, 1], [], []>} : vector<56x150xbf16>, vector<150x16xbf16>, vector<56x16xf32> -> vector<56x16xf32>
    %c3 = arith.constant 3 : index
    %c0_10 = arith.constant 0 : index
    %c0_11 = arith.constant 0 : index
    %10 = vector.load %arg1[%c3, %c0_10, %c0_11] : memref<4x56x150xbf16, #tpu.memory_space<vmem>>, vector<1x56x150xbf16>
    %11 = vector.shape_cast %10 : vector<1x56x150xbf16> to vector<56x150xbf16>
    %cst_12 = arith.constant dense<0.000000e+00> : vector<56x16xf32>
    %12 = tpu.matmul %11, %0, %cst_12 {dimension_numbers = #tpu.dot_dimension_numbers<[1], [0], [0], [1], [0, 0, 1, 1], [], []>} : vector<56x150xbf16>, vector<150x16xbf16>, vector<56x16xf32> -> vector<56x16xf32>
    %13 = arith.maximumf %3, %6 : vector<56x16xf32>
    %14 = arith.maximumf %9, %12 : vector<56x16xf32>
    %15 = arith.maximumf %13, %14 : vector<56x16xf32>
    %c0_13 = arith.constant 0 : index
    %c0_14 = arith.constant 0 : index
    %16 = vector.load %arg3[%c0_13, %c0_14] : memref<1x16xf32, #tpu.memory_space<vmem>>, vector<1x16xf32>
    %17 = vector.broadcast %16 : vector<1x16xf32> to vector<56x16xf32>
    %18 = arith.addf %15, %17 : vector<56x16xf32>
    %cst_15 = arith.constant 0.000000e+00 : f32
    %19 = vector.broadcast %cst_15 : f32 to vector<56x16xf32>
    %20 = arith.maximumf %18, %19 : vector<56x16xf32>
    %c0_16 = arith.constant 0 : index
    %c0_17 = arith.constant 0 : index
    %21 = vector.load %arg4[%c0_16, %c0_17] : memref<56x16xf32, #tpu.memory_space<vmem>>, vector<56x16xf32>
    tpu.vector_store %arg4[%c0_16, %c0_17], %20 {strides = array<i32>} : memref<56x16xf32, #tpu.memory_space<vmem>>, vector<56x16xf32>,
    return
  }
  func.func @transform_0(%arg0: i32) -> (i32, i32, i32) {
    %c0_i32 = arith.constant 0 : i32
    %c0_i32_0 = arith.constant 0 : i32
    %c0_i32_1 = arith.constant 0 : i32
    return %c0_i32, %arg0, %c0_i32_0 : i32, i32, i32
  }
  func.func @transform_1(%arg0: i32) -> (i32, i32) {
    %c0_i32 = arith.constant 0 : i32
    %c0_i32_0 = arith.constant 0 : i32
    %c0_i32_1 = arith.constant 0 : i32
    return %c0_i32, %c0_i32_0 : i32, i32
  }
  func.func @transform_2(%arg0: i32) -> (i32, i32) {
    %c0_i32 = arith.constant 0 : i32
    %c0_i32_0 = arith.constant 0 : i32
    %c0_i32_1 = arith.constant 0 : i32
    return %c0_i32, %c0_i32_0 : i32, i32
  }
  func.func @transform_3(%arg0: i32) -> (i32, i32) {
    %c0_i32 = arith.constant 0 : i32
    %c0_i32_0 = arith.constant 0 : i32
    return %arg0, %c0_i32 : i32, i32
  }
}

module attributes {stable_mosaic.version = 11 : i64} {
  func.func @_fc_stack_kernel(%arg0: memref<2x400xf32, #tpu.memory_space<vmem>>, %arg1: memref<400x120xf32, #tpu.memory_space<vmem>>, %arg2: memref<1x120xf32, #tpu.memory_space<vmem>>, %arg3: memref<120x84xf32, #tpu.memory_space<vmem>>, %arg4: memref<1x84xf32, #tpu.memory_space<vmem>>, %arg5: memref<84x10xf32, #tpu.memory_space<vmem>>, %arg6: memref<1x10xf32, #tpu.memory_space<vmem>>, %arg7: memref<2x10xf32, #tpu.memory_space<vmem>>) attributes {dimension_semantics = [], scalar_prefetch = 0 : i64, scratch_operands = 0 : i64, tpu.core_type = #tpu.core_type<tc>} {
    %c0 = arith.constant 0 : index
    %c0_0 = arith.constant 0 : index
    %0 = vector.load %arg0[%c0, %c0_0] : memref<2x400xf32, #tpu.memory_space<vmem>>, vector<2x400xf32>
    %c0_1 = arith.constant 0 : index
    %c0_2 = arith.constant 0 : index
    %1 = vector.load %arg1[%c0_1, %c0_2] : memref<400x120xf32, #tpu.memory_space<vmem>>, vector<400x120xf32>
    %cst = arith.constant dense<0.000000e+00> : vector<2x120xf32>
    %2 = tpu.matmul %0, %1, %cst {dimension_numbers = #tpu.dot_dimension_numbers<[1], [0], [0], [1], [0, 0, 1, 1], [], []>} : vector<2x400xf32>, vector<400x120xf32>, vector<2x120xf32> -> vector<2x120xf32>
    %c0_3 = arith.constant 0 : index
    %c0_4 = arith.constant 0 : index
    %3 = vector.load %arg2[%c0_3, %c0_4] : memref<1x120xf32, #tpu.memory_space<vmem>>, vector<1x120xf32>
    %4 = vector.broadcast %3 : vector<1x120xf32> to vector<2x120xf32>
    %5 = arith.addf %2, %4 : vector<2x120xf32>
    %cst_5 = arith.constant 0.000000e+00 : f32
    %6 = vector.broadcast %cst_5 : f32 to vector<2x120xf32>
    %7 = arith.maximumf %5, %6 : vector<2x120xf32>
    %c0_6 = arith.constant 0 : index
    %c0_7 = arith.constant 0 : index
    %8 = vector.load %arg3[%c0_6, %c0_7] : memref<120x84xf32, #tpu.memory_space<vmem>>, vector<120x84xf32>
    %cst_8 = arith.constant dense<0.000000e+00> : vector<2x84xf32>
    %9 = tpu.matmul %7, %8, %cst_8 {dimension_numbers = #tpu.dot_dimension_numbers<[1], [0], [0], [1], [0, 0, 1, 1], [], []>} : vector<2x120xf32>, vector<120x84xf32>, vector<2x84xf32> -> vector<2x84xf32>
    %c0_9 = arith.constant 0 : index
    %c0_10 = arith.constant 0 : index
    %10 = vector.load %arg4[%c0_9, %c0_10] : memref<1x84xf32, #tpu.memory_space<vmem>>, vector<1x84xf32>
    %11 = vector.broadcast %10 : vector<1x84xf32> to vector<2x84xf32>
    %12 = arith.addf %9, %11 : vector<2x84xf32>
    %cst_11 = arith.constant 0.000000e+00 : f32
    %13 = vector.broadcast %cst_11 : f32 to vector<2x84xf32>
    %14 = arith.maximumf %12, %13 : vector<2x84xf32>
    %c0_12 = arith.constant 0 : index
    %c0_13 = arith.constant 0 : index
    %15 = vector.load %arg5[%c0_12, %c0_13] : memref<84x10xf32, #tpu.memory_space<vmem>>, vector<84x10xf32>
    %cst_14 = arith.constant dense<0.000000e+00> : vector<2x10xf32>
    %16 = tpu.matmul %14, %15, %cst_14 {dimension_numbers = #tpu.dot_dimension_numbers<[1], [0], [0], [1], [0, 0, 1, 1], [], []>} : vector<2x84xf32>, vector<84x10xf32>, vector<2x10xf32> -> vector<2x10xf32>
    %c0_15 = arith.constant 0 : index
    %c0_16 = arith.constant 0 : index
    %17 = vector.load %arg6[%c0_15, %c0_16] : memref<1x10xf32, #tpu.memory_space<vmem>>, vector<1x10xf32>
    %18 = vector.broadcast %17 : vector<1x10xf32> to vector<2x10xf32>
    %19 = arith.addf %16, %18 : vector<2x10xf32>
    %c0_17 = arith.constant 0 : index
    %c0_18 = arith.constant 0 : index
    %20 = vector.load %arg7[%c0_17, %c0_18] : memref<2x10xf32, #tpu.memory_space<vmem>>, vector<2x10xf32>
    tpu.vector_store %arg7[%c0_17, %c0_18], %19 {strides = array<i32>} : memref<2x10xf32, #tpu.memory_space<vmem>>, vector<2x10xf32>,
    return
  }
}

</mosaic_0001>

<bundles_post_ra>
// kernel: simple_cnn_forward.3
= control target key start
LH: loop header
LB: loop body
LE: loop exit
PB: predicated region body
PF: predicated region fallthrough
CT: control target
= control target key end

     0   :  { %v4661_v0 = vmov 0.0   ;;  %vm3309_vm0 = vmmov 0   ;;  %vm302_vm1 = vcmask 1044480   ;;  %vm303_vm2 = vcmask 1045504   ;;  %s4657_s1 = inlined_call_operand.vmem [shape: bf16[75,6], index: 1, kind: input, shape index: {}]   ;;  %s4658_s0 = inlined_call_operand.vmem [shape: bf16[4,392,75], index: 0, kind: input, shape index: {}]   ;;  %s4659_s2 = inlined_call_operand.vmem [shape: f32[1,6], index: 2, kind: input, shape index: {}]   ;;  %s4660_s3 = inlined_call_operand.vmem [shape: f32[392,6], index: 3, kind: output, shape index: {}]  }
   0x1   :  { %2760 = vmatprep.subr.bf16.mxu0 %v4661_v0  ;;  %2870 = vmatprep.subr.bf16.mxu1 %v4661_v0  ;;  %v3203_v1 = vld [vmem:[%s4657_s1] sm:$0xff]   ;;  %v3204_v2 = vld [vmem:[%s4657_s1 + $0x8] sm:$0xff]   ;;  %v3205_v3 = vld [vmem:[%s4657_s1 + $0x10] sm:$0xff]   ;;  %v3310_v4 = vmov 65535   ;;  %vm226_vm3 = vcmask 613376   ;;  %vm2233_vm4 = vcmask 48128  }
   0x2   :  { %2761 = vmatpush3.bf16.msra.mxu0 %v3203_v1  ;;  %2871 = vmatpush3.bf16.msra.mxu1 %v3203_v1  ;;  %v304_v5 = vsel %vm302_vm1, 4294967295, %v3310_v4  ;;  %v3206_v6 = vld [vmem:[%s4657_s1 + $0x18] sm:$0xff]   ;;  %v3207_v7 = vld [vmem:[%s4657_s1 + $0x20] sm:$0x3f]   ;;  %v3210_v12 = vld [vmem:[%s4658_s0 + $0x8] sm:$0xff]  }
   0x3   :  { %2762 = vmatprep.subr.bf16.mxu0 %v4661_v0  ;;  %2872 = vmatprep.subr.bf16.mxu1 %v4661_v0  ;;  %v305_v8 = vsel %vm303_vm2, %v304_v5, 0  ;;  %v3208_v10 = vld [vmem:[%s4658_s0] sm:$0xff]   ;;  %v3211_v13 = vld [vmem:[%s4658_s0 + $0xcc] sm:$0xff]   ;;  %v3213_v15 = vld [vmem:[%s4658_s0 + $0xd4] sm:$0xff]  }
   0x4   :  { %2770 = vmatprep.mubr.msk.bf16.mxu0 %vm3309_vm0, %v4661_v0  ;;  %2880 = vmatprep.mubr.msk.bf16.mxu1 %vm3309_vm0, %v4661_v0  ;;  %v307_v9 = vand.u32 %v3207_v7, %v305_v8  ;;  %v3209_v11 = vld [vmem:[%s4658_s0 + $0xc4] sm:$0xff]   ;;  %v3212_v14 = vld [vmem:[%s4658_s0 + $0x10] sm:$0xff]   ;;  %v3214_v16 = vld [vmem:[%s4658_s0 + $0x18] sm:$0xff]  }
   0x5   :  { %v3215_v17 = vld [vmem:[%s4658_s0 + $0xdc] sm:$0xff]   ;;  %v3217_v19 = vld [vmem:[%s4658_s0 + $0xe4] sm:$0xff]   ;;  %v3219_v21 = vld [vmem:[%s4658_s0 + $0xec] sm:$0xff]  }
   0x6   :  { %2763 = vmatpush3.bf16.msra.mxu0 %v3204_v2  ;;  %2873 = vmatpush3.bf16.msra.mxu1 %v3204_v2  ;;  %v3216_v18 = vld [vmem:[%s4658_s0 + $0x20] sm:$0xff]   ;;  %v3218_v20 = vld [vmem:[%s4658_s0 + $0x28] sm:$0xff]   ;;  %v3220_v22 = vld [vmem:[%s4658_s0 + $0x30] sm:$0xff]  }
   0x7   :  { %2764 = vmatprep.subr.bf16.mxu0 %v4661_v0  ;;  %2874 = vmatprep.subr.bf16.mxu1 %v4661_v0  ;;  %v3221_v23 = vld [vmem:[%s4658_s0 + $0xf4] sm:$0xff]   ;;  %v3223_v25 = vld [vmem:[%s4658_s0 + $0xfc] sm:$0xff]   ;;  %v3225_v27 = vld [vmem:[%s4658_s0 + $0x104] sm:$0xff]  }
   0x8   :  { %v3222_v24 = vld [vmem:[%s4658_s0 + $0x38] sm:$0xff]   ;;  %v3224_v26 = vld [vmem:[%s4658_s0 + $0x40] sm:$0xff]   ;;  %v3226_v28 = vld [vmem:[%s4658_s0 + $0x48] sm:$0xff]  }
   0x9   :  { %v3227_v29 = vld [vmem:[%s4658_s0 + $0x10c] sm:$0xff]   ;;  %v3229_v31 = vld [vmem:[%s4658_s0 + $0x114] sm:$0xff]   ;;  %v3231_v33 = vld [vmem:[%s4658_s0 + $0x11c] sm:$0xff]  }
   0xa   :  { %2765 = vmatpush3.bf16.msra.mxu0 %v3205_v3  ;;  %2875 = vmatpush3.bf16.msra.mxu1 %v3205_v3  ;;  %v3228_v30 = vld [vmem:[%s4658_s0 + $0x50] sm:$0xff]   ;;  %v3230_v32 = vld [vmem:[%s4658_s0 + $0x58] sm:$0xff]   ;;  %v3232_v34 = vld [vmem:[%s4658_s0 + $0x60] sm:$0xff]  }
   0xb   :  { %2766 = vmatprep.subr.bf16.mxu0 %v4661_v0  ;;  %2876 = vmatprep.subr.bf16.mxu1 %v4661_v0  ;;  %v3233_v35 = vld [vmem:[%s4658_s0 + $0x124] sm:$0xff]   ;;  %v3235_v37 = vld [vmem:[%s4658_s0 + $0x12c] sm:$0xff]   ;;  %v3237_v39 = vld [vmem:[%s4658_s0 + $0x134] sm:$0xff]  }
   0xc   :  { %v3234_v36 = vld [vmem:[%s4658_s0 + $0x68] sm:$0xff]   ;;  %v3236_v38 = vld [vmem:[%s4658_s0 + $0x70] sm:$0xff]   ;;  %v3238_v40 = vld [vmem:[%s4658_s0 + $0x78] sm:$0xff]  }
   0xd   :  { %v3239_v41 = vld [vmem:[%s4658_s0 + $0x13c] sm:$0xff]   ;;  %v3241_v43 = vld [vmem:[%s4658_s0 + $0x144] sm:$0xff]   ;;  %v3243_v45 = vld [vmem:[%s4658_s0 + $0x14c] sm:$0xff]  }
   0xe   :  { %2767 = vmatpush3.bf16.msra.mxu0 %v3206_v6  ;;  %2877 = vmatpush3.bf16.msra.mxu1 %v3206_v6  ;;  %v3240_v42 = vld [vmem:[%s4658_s0 + $0x80] sm:$0xff]   ;;  %v3242_v44 = vld [vmem:[%s4658_s0 + $0x88] sm:$0xff]   ;;  %v3244_v46 = vld [vmem:[%s4658_s0 + $0x90] sm:$0xff]  }
   0xf   :  { %2768 = vmatprep.subr.bf16.mxu0 %v4661_v0  ;;  %2878 = vmatprep.subr.bf16.mxu1 %v4661_v0  ;;  %v3245_v47 = vld [vmem:[%s4658_s0 + $0x154] sm:$0xff]   ;;  %v3247_v49 = vld [vmem:[%s4658_s0 + $0x15c] sm:$0xff]   ;;  %v3249_v51 = vld [vmem:[%s4658_s0 + $0x164] sm:$0xff]  }
  0x10   :  { %v3246_v48 = vld [vmem:[%s4658_s0 + $0x98] sm:$0xff]   ;;  %v3248_v50 = vld [vmem:[%s4658_s0 + $0xa0] sm:$0xff]   ;;  %v3250_v52 = vld [vmem:[%s4658_s0 + $0xa8] sm:$0xff]  }
  0x11   :  { %v3251_v53 = vld [vmem:[%s4658_s0 + $0x16c] sm:$0xff]   ;;  %v3253_v55 = vld [vmem:[%s4658_s0 + $0x174] sm:$0xff]   ;;  %v3255_v57 = vld [vmem:[%s4658_s0 + $0x17c] sm:$0xff]  }
  0x12   :  { %2769 = vmatpush3.bf16.msra.mxu0 %v307_v9  ;;  %2879 = vmatpush3.bf16.msra.mxu1 %v307_v9  ;;  %v3252_v54 = vld [vmem:[%s4658_s0 + $0xb0] sm:$0xff]   ;;  %v3254_v56 = vld [vmem:[%s4658_s0 + $0xb8] sm:$0xff]   ;;  %v3256_v58 = vld [vmem:[%s4658_s0 + $0xc0] ss:$0 sps:$4 sm:$0xff]  }
  0x13   :  { %2980 = vmatprep.subr.bf16.mxu0 %v4661_v0  ;;  %3090 = vmatprep.subr.bf16.mxu1 %v4661_v0  ;;  %v3257_v59 = vld [vmem:[%s4658_s0 + $0x184] ss:$0 sps:$4 sm:$0xff]   ;;  %v3258_v60 = vld [vmem:[%s4658_s0 + $0x188] sm:$0xff]   ;;  %v3260_v62 = vld [vmem:[%s4658_s0 + $0x190] sm:$0xff]  }
  0x14   :  { %v3259_v61 = vld [vmem:[%s4658_s0 + $0x24c] sm:$0xff]   ;;  %v3261_v63 = vld [vmem:[%s4658_s0 + $0x254] sm:$0xff]   ;;  %v3263_v7 = vld [vmem:[%s4658_s0 + $0x25c] sm:$0xff]  }
  0x15   :  { %2771 = vmatmul.mubr.msk.bf16.vlgmr.msra.gmra.mrb[0].mxu0 %vm226_vm3, %v3208_v10  ;;  %2881 = vmatmul.mubr.msk.bf16.vlgmr.msra.gmra.mrb[0].mxu1 %vm226_vm3, %v3209_v11 }
  0x16   :  { %2981 = vmatpush3.bf16.msra.mxu0 %v3203_v1  ;;  %3091 = vmatpush3.bf16.msra.mxu1 %v3203_v1 }
  0x17   :  { %2774 = vmatprep.mubr.msk.bf16.mxu0 %vm3309_vm0, %v4661_v0  ;;  %2884 = vmatprep.mubr.msk.bf16.mxu1 %vm3309_vm0, %v4661_v0 }
  0x18   :  { %2982 = vmatprep.subr.bf16.mxu0 %v4661_v0  ;;  %3092 = vmatprep.subr.bf16.mxu1 %v4661_v0 }
  0x1a   :  { %2983 = vmatpush3.bf16.msra.mxu0 %v3204_v2  ;;  %3093 = vmatpush3.bf16.msra.mxu1 %v3204_v2 }
  0x1b   :  { %2984 = vmatprep.subr.bf16.mxu0 %v4661_v0  ;;  %3094 = vmatprep.subr.bf16.mxu1 %v4661_v0 }
  0x1d   :  { %2775 = vmatmul.mubr.msk.bf16.gmra.mrb[4].mxu0 %vm226_vm3, %v3210_v12  ;;  %2885 = vmatmul.mubr.msk.bf16.gmra.mrb[4].mxu1 %vm226_vm3, %v3211_v13 }
  0x1e   :  { %2778 = vmatprep.mubr.msk.bf16.mxu0 %vm3309_vm0, %v4661_v0  ;;  %2888 = vmatprep.mubr.msk.bf16.mxu1 %vm3309_vm0, %v4661_v0 }
  0x1f   :  { %2985 = vmatpush3.bf16.msra.mxu0 %v3205_v3  ;;  %3095 = vmatpush3.bf16.msra.mxu1 %v3205_v3 }
  0x20   :  { %2986 = vmatprep.subr.bf16.mxu0 %v4661_v0  ;;  %3096 = vmatprep.subr.bf16.mxu1 %v4661_v0 }
  0x23   :  { %2987 = vmatpush3.bf16.msra.mxu0 %v3206_v6  ;;  %3097 = vmatpush3.bf16.msra.mxu1 %v3206_v6  ;;  %v3262_v6 = vld [vmem:[%s4658_s0 + $0x198] sm:$0xff]  }
  0x24   :  { %2988 = vmatprep.subr.bf16.mxu0 %v4661_v0  ;;  %3098 = vmatprep.subr.bf16.mxu1 %v4661_v0 }
  0x25   :  { %2779 = vmatmul.mubr.msk.bf16.gmra.mrb[8].mxu0 %vm226_vm3, %v3212_v14  ;;  %2889 = vmatmul.mubr.msk.bf16.gmra.mrb[8].mxu1 %vm226_vm3, %v3213_v15 }
  0x26   :  { %2782 = vmatprep.mubr.msk.bf16.mxu0 %vm3309_vm0, %v4661_v0  ;;  %2892 = vmatprep.mubr.msk.bf16.mxu1 %vm3309_vm0, %v4661_v0 }
  0x27   :  { %2989 = vmatpush3.bf16.msra.mxu0 %v307_v9  ;;  %3099 = vmatpush3.bf16.msra.mxu1 %v307_v9 }
  0x2d   :  { %2783 = vmatmul.mubr.msk.bf16.gmra.mrb[12].mxu0 %vm226_vm3, %v3214_v16  ;;  %2893 = vmatmul.mubr.msk.bf16.gmra.mrb[12].mxu1 %vm226_vm3, %v3215_v17 }
  0x2e   :  { %2786 = vmatprep.mubr.msk.bf16.mxu0 %vm3309_vm0, %v4661_v0  ;;  %2896 = vmatprep.mubr.msk.bf16.mxu1 %vm3309_vm0, %v4661_v0 }
  0x35   :  { %2787 = vmatmul.mubr.msk.bf16.gmra.mrb[16].mxu0 %vm226_vm3, %v3216_v18  ;;  %2897 = vmatmul.mubr.msk.bf16.gmra.mrb[16].mxu1 %vm226_vm3, %v3217_v19  ;;  %v3264_v18 = vld [vmem:[%s4658_s0 + $0x1a0] sm:$0xff]  }
  0x36   :  { %2790 = vmatprep.mubr.msk.bf16.mxu0 %vm3309_vm0, %v4661_v0  ;;  %2900 = vmatprep.mubr.msk.bf16.mxu1 %vm3309_vm0, %v4661_v0  ;;  %v3265_v19 = vld [vmem:[%s4658_s0 + $0x264] sm:$0xff]  }
  0x3d   :  { %2791 = vmatmul.mubr.msk.bf16.gmra.mrb[20].mxu0 %vm226_vm3, %v3218_v20  ;;  %2901 = vmatmul.mubr.msk.bf16.gmra.mrb[20].mxu1 %vm226_vm3, %v3219_v21 }
  0x3e   :  { %2794 = vmatprep.mubr.msk.bf16.mxu0 %vm3309_vm0, %v4661_v0  ;;  %2904 = vmatprep.mubr.msk.bf16.mxu1 %vm3309_vm0, %v4661_v0 }
  0x45   :  { %2795 = vmatmul.mubr.msk.bf16.gmra.mrb[24].mxu0 %vm226_vm3, %v3220_v22  ;;  %2905 = vmatmul.mubr.msk.bf16.gmra.mrb[24].mxu1 %vm226_vm3, %v3221_v23 }
  0x46   :  { %2798 = vmatprep.mubr.msk.bf16.mxu0 %vm3309_vm0, %v4661_v0  ;;  %2908 = vmatprep.mubr.msk.bf16.mxu1 %vm3309_vm0, %v4661_v0 }
  0x4d   :  { %2799 = vmatmul.mubr.msk.bf16.gmra.mrb[28].mxu0 %vm226_vm3, %v3222_v24  ;;  %2909 = vmatmul.mubr.msk.bf16.gmra.mrb[28].mxu1 %vm226_vm3, %v3223_v25 }
  0x4e   :  { %2802 = vmatprep.mubr.msk.bf16.mxu0 %vm3309_vm0, %v4661_v0  ;;  %2912 = vmatprep.mubr.msk.bf16.mxu1 %vm3309_vm0, %v4661_v0 }
  0x55   :  { %2803 = vmatmul.mubr.msk.bf16.gmra.mrb[32].mxu0 %vm226_vm3, %v3224_v26  ;;  %2913 = vmatmul.mubr.msk.bf16.gmra.mrb[32].mxu1 %vm226_vm3, %v3225_v27 }
  0x56   :  { %2806 = vmatprep.mubr.msk.bf16.mxu0 %vm3309_vm0, %v4661_v0  ;;  %2916 = vmatprep.mubr.msk.bf16.mxu1 %vm3309_vm0, %v4661_v0 }
  0x5d   :  { %2807 = vmatmul.mubr.msk.bf16.gmra.mrb[36].mxu0 %vm226_vm3, %v3226_v28  ;;  %2917 = vmatmul.mubr.msk.bf16.gmra.mrb[36].mxu1 %vm226_vm3, %v3227_v29 }
  0x5e   :  { %2810 = vmatprep.mubr.msk.bf16.mxu0 %vm3309_vm0, %v4661_v0  ;;  %2920 = vmatprep.mubr.msk.bf16.mxu1 %vm3309_vm0, %v4661_v0 }
  0x65   :  { %2811 = vmatmul.mubr.msk.bf16.gmra.mrb[40].mxu0 %vm226_vm3, %v3228_v30  ;;  %2921 = vmatmul.mubr.msk.bf16.gmra.mrb[40].mxu1 %vm226_vm3, %v3229_v31  ;;  %v3266_v30 = vld [vmem:[%s4658_s0 + $0x1a8] sm:$0xff]  }
  0x66   :  { %2814 = vmatprep.mubr.msk.bf16.mxu0 %vm3309_vm0, %v4661_v0  ;;  %2924 = vmatprep.mubr.msk.bf16.mxu1 %vm3309_vm0, %v4661_v0  ;;  %v3267_v31 = vld [vmem:[%s4658_s0 + $0x26c] sm:$0xff]  }
  0x6d   :  { %2815 = vmatmul.mubr.msk.bf16.gmra.mrb[44].mxu0 %vm226_vm3, %v3230_v32  ;;  %2925 = vmatmul.mubr.msk.bf16.gmra.mrb[44].mxu1 %vm226_vm3, %v3231_v33 }
  0x6e   :  { %2818 = vmatprep.mubr.msk.bf16.mxu0 %vm3309_vm0, %v4661_v0  ;;  %2928 = vmatprep.mubr.msk.bf16.mxu1 %vm3309_vm0, %v4661_v0 }
  0x75   :  { %2819 = vmatmul.mubr.msk.bf16.gmra.mrb[48].mxu0 %vm226_vm3, %v3232_v34  ;;  %2929 = vmatmul.mubr.msk.bf16.gmra.mrb[48].mxu1 %vm226_vm3, %v3233_v35 }
  0x76   :  { %2822 = vmatprep.mubr.msk.bf16.mxu0 %vm3309_vm0, %v4661_v0  ;;  %2932 = vmatprep.mubr.msk.bf16.mxu1 %vm3309_vm0, %v4661_v0 }
  0x7d   :  { %2823 = vmatmul.mubr.msk.bf16.gmra.mrb[52].mxu0 %vm226_vm3, %v3234_v36  ;;  %2933 = vmatmul.mubr.msk.bf16.gmra.mrb[52].mxu1 %vm226_vm3, %v3235_v37 }
  0x7e   :  { %2826 = vmatprep.mubr.msk.bf16.mxu0 %vm3309_vm0, %v4661_v0  ;;  %2936 = vmatprep.mubr.msk.bf16.mxu1 %vm3309_vm0, %v4661_v0 }
  0x85   :  { %2827 = vmatmul.mubr.msk.bf16.gmra.mrb[56].mxu0 %vm226_vm3, %v3236_v38  ;;  %2937 = vmatmul.mubr.msk.bf16.gmra.mrb[56].mxu1 %vm226_vm3, %v3237_v39 }
  0x86   :  { %2830 = vmatprep.mubr.msk.bf16.mxu0 %vm3309_vm0, %v4661_v0  ;;  %2940 = vmatprep.mubr.msk.bf16.mxu1 %vm3309_vm0, %v4661_v0 }
  0x8d   :  { %2831 = vmatmul.mubr.msk.bf16.gmra.mrb[60].mxu0 %vm226_vm3, %v3238_v40  ;;  %2941 = vmatmul.mubr.msk.bf16.gmra.mrb[60].mxu1 %vm226_vm3, %v3239_v41 }
  0x8e   :  { %2834 = vmatprep.mubr.msk.bf16.mxu0 %vm3309_vm0, %v4661_v0  ;;  %2944 = vmatprep.mubr.msk.bf16.mxu1 %vm3309_vm0, %v4661_v0 }
  0x95   :  { %2835 = vmatmul.mubr.msk.bf16.gmra.mrb[64].mxu0 %vm226_vm3, %v3240_v42  ;;  %2945 = vmatmul.mubr.msk.bf16.gmra.mrb[64].mxu1 %vm226_vm3, %v3241_v43  ;;  %v3268_v42 = vld [vmem:[%s4658_s0 + $0x1b0] sm:$0xff]  }
  0x96   :  { %2838 = vmatprep.mubr.msk.bf16.mxu0 %vm3309_vm0, %v4661_v0  ;;  %2948 = vmatprep.mubr.msk.bf16.mxu1 %vm3309_vm0, %v4661_v0  ;;  %v3269_v43 = vld [vmem:[%s4658_s0 + $0x274] sm:$0xff]  }
  0x9d   :  { %2839 = vmatmul.mubr.msk.bf16.gmra.mrb[68].mxu0 %vm226_vm3, %v3242_v44  ;;  %2949 = vmatmul.mubr.msk.bf16.gmra.mrb[68].mxu1 %vm226_vm3, %v3243_v45 }
  0x9e   :  { %2842 = vmatprep.mubr.msk.bf16.mxu0 %vm3309_vm0, %v4661_v0  ;;  %2952 = vmatprep.mubr.msk.bf16.mxu1 %vm3309_vm0, %v4661_v0 }
  0xa5   :  { %2843 = vmatmul.mubr.msk.bf16.gmra.mrb[72].mxu0 %vm226_vm3, %v3244_v46  ;;  %2953 = vmatmul.mubr.msk.bf16.gmra.mrb[72].mxu1 %vm226_vm3, %v3245_v47 }
  0xa6   :  { %2846 = vmatprep.mubr.msk.bf16.mxu0 %vm3309_vm0, %v4661_v0  ;;  %2956 = vmatprep.mubr.msk.bf16.mxu1 %vm3309_vm0, %v4661_v0 }
  0xad   :  { %2847 = vmatmul.mubr.msk.bf16.gmra.mrb[76].mxu0 %vm226_vm3, %v3246_v48  ;;  %2957 = vmatmul.mubr.msk.bf16.gmra.mrb[76].mxu1 %vm226_vm3, %v3247_v49 }
  0xae   :  { %2850 = vmatprep.mubr.msk.bf16.mxu0 %vm3309_vm0, %v4661_v0  ;;  %2960 = vmatprep.mubr.msk.bf16.mxu1 %vm3309_vm0, %v4661_v0 }
  0xb5   :  { %2851 = vmatmul.mubr.msk.bf16.gmra.mrb[80].mxu0 %vm226_vm3, %v3248_v50  ;;  %2961 = vmatmul.mubr.msk.bf16.gmra.mrb[80].mxu1 %vm226_vm3, %v3249_v51 }
  0xb6   :  { %2854 = vmatprep.mubr.msk.bf16.mxu0 %vm3309_vm0, %v4661_v0  ;;  %2964 = vmatprep.mubr.msk.bf16.mxu1 %vm3309_vm0, %v4661_v0 }
  0xbd   :  { %2855 = vmatmul.mubr.msk.bf16.gmra.mrb[84].mxu0 %vm226_vm3, %v3250_v52  ;;  %2965 = vmatmul.mubr.msk.bf16.gmra.mrb[84].mxu1 %vm226_vm3, %v3251_v53 }
  0xbe   :  { %2858 = vmatprep.mubr.msk.bf16.mxu0 %vm3309_vm0, %v4661_v0  ;;  %2968 = vmatprep.mubr.msk.bf16.mxu1 %vm3309_vm0, %v4661_v0 }
  0xc5   :  { %2859 = vmatmul.mubr.msk.bf16.gmra.mrb[88].mxu0 %vm226_vm3, %v3252_v54  ;;  %2969 = vmatmul.mubr.msk.bf16.gmra.mrb[88].mxu1 %vm226_vm3, %v3253_v55  ;;  %v3270_v54 = vld [vmem:[%s4658_s0 + $0x1b8] sm:$0xff]  }
  0xc6   :  { %2862 = vmatprep.mubr.msk.bf16.mxu0 %vm3309_vm0, %v4661_v0  ;;  %2972 = vmatprep.mubr.msk.bf16.mxu1 %vm3309_vm0, %v4661_v0  ;;  %v3271_v55 = vld [vmem:[%s4658_s0 + $0x27c] sm:$0xff]  }
  0xcd   :  { %2863 = vmatmul.mubr.msk.bf16.gmra.mrb[92].mxu0 %vm226_vm3, %v3254_v56  ;;  %2973 = vmatmul.mubr.msk.bf16.gmra.mrb[92].mxu1 %vm226_vm3, %v3255_v57 }
  0xce   :  { %2866 = vmatprep.mubr.msk.bf16.mxu0 %vm3309_vm0, %v4661_v0  ;;  %2976 = vmatprep.mubr.msk.bf16.mxu1 %vm3309_vm0, %v4661_v0 }
  0xd5   :  { %2867 = vmatmul.mubr.msk.bf16.gmra.mrb[96].mxu0 %vm226_vm3, %v3256_v58  ;;  %2977 = vmatmul.mubr.msk.bf16.gmra.mrb[96].mxu1 %vm226_vm3, %v3257_v59 }
  0xd6   :  { %2990 = vmatprep.mubr.msk.bf16.mxu0 %vm3309_vm0, %v4661_v0  ;;  %3100 = vmatprep.mubr.msk.bf16.mxu1 %vm3309_vm0, %v4661_v0 }
  0xdd   :  { %2991 = vmatmul.mubr.msk.bf16.vlgmr.msra.gmra.mrb[100].mxu0 %vm226_vm3, %v3258_v60  ;;  %3101 = vmatmul.mubr.msk.bf16.vlgmr.msra.gmra.mrb[100].mxu1 %vm226_vm3, %v3259_v61 }
  0xde   :  { %2994 = vmatprep.mubr.msk.bf16.mxu0 %vm3309_vm0, %v4661_v0  ;;  %3104 = vmatprep.mubr.msk.bf16.mxu1 %vm3309_vm0, %v4661_v0 }
  0xe5   :  { %2995 = vmatmul.mubr.msk.bf16.gmra.mrb[104].mxu0 %vm226_vm3, %v3260_v62  ;;  %3105 = vmatmul.mubr.msk.bf16.gmra.mrb[104].mxu1 %vm226_vm3, %v3261_v63 }
  0xe6   :  { %2998 = vmatprep.mubr.msk.bf16.mxu0 %vm3309_vm0, %v4661_v0  ;;  %3108 = vmatprep.mubr.msk.bf16.mxu1 %vm3309_vm0, %v4661_v0 }
  0xe8   :  { %v3694_v1 = vpop.f32.mrb[0].mxu0  ;;  %v3696_v2 = vpop.f32.mrb[0].mxu1 }
  0xe9   :  { %v2772_v4 = vpop.f32.mrb[1].mxu0  ;;  %v2882_v5 = vpop.f32.mrb[1].mxu1 }
  0xea   :  { %v3706_v8 = vpop.f32.mrb[2].mxu0  ;;  %v3708_v9 = vpop.f32.mrb[2].mxu1 }
  0xeb   :  { %v2773_v11 = vpop.f32.mrb[3].mxu0  ;;  %v2883_v12 = vpop.f32.mrb[3].mxu1 }
  0xed   :  { %2999 = vmatmul.mubr.msk.bf16.gmra.mrb[108].mxu0 %vm226_vm3, %v3262_v6  ;;  %3109 = vmatmul.mubr.msk.bf16.gmra.mrb[108].mxu1 %vm226_vm3, %v3263_v7  ;;  %v3272_v6 = vld [vmem:[%s4658_s0 + $0x1c0] sm:$0xff]  }
  0xee   :  { %3002 = vmatprep.mubr.msk.bf16.mxu0 %vm3309_vm0, %v4661_v0  ;;  %3112 = vmatprep.mubr.msk.bf16.mxu1 %vm3309_vm0, %v4661_v0  ;;  %v3273_v7 = vld [vmem:[%s4658_s0 + $0x284] sm:$0xff]  }
  0xf0   :  { %v3718_v13 = vpop.f32.mrb[4].mxu0  ;;  %v3720_v14 = vpop.f32.mrb[4].mxu1 }
  0xf1   :  { %v2776_v16 = vpop.f32.mrb[5].mxu0  ;;  %v2886_v17 = vpop.f32.mrb[5].mxu1 }
  0xf2   :  { %v3730_v20 = vpop.f32.mrb[6].mxu0  ;;  %v3732_v21 = vpop.f32.mrb[6].mxu1 }
  0xf3   :  { %v2777_v23 = vpop.f32.mrb[7].mxu0  ;;  %v2887_v24 = vpop.f32.mrb[7].mxu1 }
  0xf5   :  { %3003 = vmatmul.mubr.msk.bf16.gmra.mrb[112].mxu0 %vm226_vm3, %v3264_v18  ;;  %3113 = vmatmul.mubr.msk.bf16.gmra.mrb[112].mxu1 %vm226_vm3, %v3265_v19 }
  0xf6   :  { %3006 = vmatprep.mubr.msk.bf16.mxu0 %vm3309_vm0, %v4661_v0  ;;  %3116 = vmatprep.mubr.msk.bf16.mxu1 %vm3309_vm0, %v4661_v0 }
  0xf8   :  { %v3742_v25 = vpop.f32.mrb[8].mxu0  ;;  %v3744_v26 = vpop.f32.mrb[8].mxu1 }
  0xf9   :  { %v2780_v28 = vpop.f32.mrb[9].mxu0  ;;  %v2890_v29 = vpop.f32.mrb[9].mxu1 }
  0xfa   :  { %v3754_v32 = vpop.f32.mrb[10].mxu0  ;;  %v3756_v33 = vpop.f32.mrb[10].mxu1 }
  0xfb   :  { %v2781_v35 = vpop.f32.mrb[11].mxu0  ;;  %v2891_v36 = vpop.f32.mrb[11].mxu1 }
  0xfd   :  { %3007 = vmatmul.mubr.msk.bf16.gmra.mrb[116].mxu0 %vm226_vm3, %v3266_v30  ;;  %3117 = vmatmul.mubr.msk.bf16.gmra.mrb[116].mxu1 %vm226_vm3, %v3267_v31  ;;  %v3274_v30 = vld [vmem:[%s4658_s0 + $0x1c8] sm:$0xff]  }
  0xfe   :  { %3010 = vmatprep.mubr.msk.bf16.mxu0 %vm3309_vm0, %v4661_v0  ;;  %3120 = vmatprep.mubr.msk.bf16.mxu1 %vm3309_vm0, %v4661_v0  ;;  %v3275_v31 = vld [vmem:[%s4658_s0 + $0x28c] sm:$0xff]  }
 0x100   :  { %v3766_v37 = vpop.f32.mrb[12].mxu0  ;;  %v3768_v38 = vpop.f32.mrb[12].mxu1 }
 0x101   :  { %v2784_v40 = vpop.f32.mrb[13].mxu0  ;;  %v2894_v41 = vpop.f32.mrb[13].mxu1 }
 0x102   :  { %v3778_v44 = vpop.f32.mrb[14].mxu0  ;;  %v3780_v45 = vpop.f32.mrb[14].mxu1 }
 0x103   :  { %v2785_v47 = vpop.f32.mrb[15].mxu0  ;;  %v2895_v48 = vpop.f32.mrb[15].mxu1 }
 0x105   :  { %3011 = vmatmul.mubr.msk.bf16.gmra.mrb[120].mxu0 %vm226_vm3, %v3268_v42  ;;  %3121 = vmatmul.mubr.msk.bf16.gmra.mrb[120].mxu1 %vm226_vm3, %v3269_v43 }
 0x106   :  { %3014 = vmatprep.mubr.msk.bf16.mxu0 %vm3309_vm0, %v4661_v0  ;;  %3124 = vmatprep.mubr.msk.bf16.mxu1 %vm3309_vm0, %v4661_v0 }
 0x108   :  { %v3790_v49 = vpop.f32.mrb[16].mxu0  ;;  %v3792_v50 = vpop.f32.mrb[16].mxu1 }
 0x109   :  { %v2788_v52 = vpop.f32.mrb[17].mxu0  ;;  %v2898_v53 = vpop.f32.mrb[17].mxu1 }
 0x10a   :  { %v3802_v56 = vpop.f32.mrb[18].mxu0  ;;  %v3804_v57 = vpop.f32.mrb[18].mxu1 }
 0x10b   :  { %v2789_v59 = vpop.f32.mrb[19].mxu0  ;;  %v2899_v60 = vpop.f32.mrb[19].mxu1 }
 0x10d   :  { %3015 = vmatmul.mubr.msk.bf16.gmra.mrb[124].mxu0 %vm226_vm3, %v3270_v54  ;;  %3125 = vmatmul.mubr.msk.bf16.gmra.mrb[124].mxu1 %vm226_vm3, %v3271_v55  ;;  %v3276_v54 = vld [vmem:[%s4658_s0 + $0x1d0] sm:$0xff]  }
 0x10e   :  { %3018 = vmatprep.mubr.msk.bf16.mxu0 %vm3309_vm0, %v4661_v0  ;;  %3128 = vmatprep.mubr.msk.bf16.mxu1 %vm3309_vm0, %v4661_v0  ;;  %v3277_v55 = vld [vmem:[%s4658_s0 + $0x294] sm:$0xff]  }
 0x110   :  { %v3814_v61 = vpop.f32.mrb[20].mxu0  ;;  %v3816_v62 = vpop.f32.mrb[20].mxu1 }
 0x111   :  { %v2792_v4 = vpop.f32.mrb[21].mxu0  ;;  %v2902_v5 = vpop.f32.mrb[21].mxu1 }
 0x112   :  { %v3826_v11 = vpop.f32.mrb[22].mxu0  ;;  %v3828_v12 = vpop.f32.mrb[22].mxu1 }
 0x113   :  { %v2793_v17 = vpop.f32.mrb[23].mxu0  ;;  %v2903_v18 = vpop.f32.mrb[23].mxu1 }
 0x115   :  { %3019 = vmatmul.mubr.msk.bf16.gmra.mrb[128].mxu0 %vm226_vm3, %v3272_v6  ;;  %3129 = vmatmul.mubr.msk.bf16.gmra.mrb[128].mxu1 %vm226_vm3, %v3273_v7 }
 0x116   :  { %3022 = vmatprep.mubr.msk.bf16.mxu0 %vm3309_vm0, %v4661_v0  ;;  %3132 = vmatprep.mubr.msk.bf16.mxu1 %vm3309_vm0, %v4661_v0 }
 0x118   :  { %v3838_v19 = vpop.f32.mrb[24].mxu0  ;;  %v3840_v23 = vpop.f32.mrb[24].mxu1 }
 0x119   :  { %v2796_v28 = vpop.f32.mrb[25].mxu0  ;;  %v2906_v29 = vpop.f32.mrb[25].mxu1 }
 0x11a   :  { %v3850_v35 = vpop.f32.mrb[26].mxu0  ;;  %v3852_v36 = vpop.f32.mrb[26].mxu1 }
 0x11b   :  { %v2797_v41 = vpop.f32.mrb[27].mxu0  ;;  %v2907_v42 = vpop.f32.mrb[27].mxu1 }
 0x11d   :  { %3023 = vmatmul.mubr.msk.bf16.gmra.mrb[132].mxu0 %vm226_vm3, %v3274_v30  ;;  %3133 = vmatmul.mubr.msk.bf16.gmra.mrb[132].mxu1 %vm226_vm3, %v3275_v31  ;;  %v3278_v30 = vld [vmem:[%s4658_s0 + $0x1d8] sm:$0xff]  }
 0x11e   :  { %3026 = vmatprep.mubr.msk.bf16.mxu0 %vm3309_vm0, %v4661_v0  ;;  %3136 = vmatprep.mubr.msk.bf16.mxu1 %vm3309_vm0, %v4661_v0  ;;  %v3279_v31 = vld [vmem:[%s4658_s0 + $0x29c] sm:$0xff]  }
 0x120   :  { %v3862_v43 = vpop.f32.mrb[28].mxu0  ;;  %v3864_v47 = vpop.f32.mrb[28].mxu1 }
 0x121   :  { %v2800_v52 = vpop.f32.mrb[29].mxu0  ;;  %v2910_v53 = vpop.f32.mrb[29].mxu1 }
 0x122   :  { %v3874_v59 = vpop.f32.mrb[30].mxu0  ;;  %v3876_v60 = vpop.f32.mrb[30].mxu1 }
 0x123   :  { %v2801_v5 = vpop.f32.mrb[31].mxu0  ;;  %v2911_v6 = vpop.f32.mrb[31].mxu1 }
 0x125   :  { %3027 = vmatmul.mubr.msk.bf16.gmra.mrb[136].mxu0 %vm226_vm3, %v3276_v54  ;;  %3137 = vmatmul.mubr.msk.bf16.gmra.mrb[136].mxu1 %vm226_vm3, %v3277_v55 }
 0x126   :  { %3030 = vmatprep.mubr.msk.bf16.mxu0 %vm3309_vm0, %v4661_v0  ;;  %3140 = vmatprep.mubr.msk.bf16.mxu1 %vm3309_vm0, %v4661_v0 }
 0x128   :  { %v3886_v7 = vpop.f32.mrb[32].mxu0  ;;  %v3888_v17 = vpop.f32.mrb[32].mxu1 }
 0x129   :  { %v2804_v28 = vpop.f32.mrb[33].mxu0  ;;  %v2914_v29 = vpop.f32.mrb[33].mxu1 }
 0x12a   :  { %v3898_v41 = vpop.f32.mrb[34].mxu0  ;;  %v3900_v42 = vpop.f32.mrb[34].mxu1 }
 0x12b   :  { %v2805_v53 = vpop.f32.mrb[35].mxu0  ;;  %v2915_v54 = vpop.f32.mrb[35].mxu1 }
 0x12d   :  { %3031 = vmatmul.mubr.msk.bf16.gmra.mrb[140].mxu0 %vm226_vm3, %v3278_v30  ;;  %3141 = vmatmul.mubr.msk.bf16.gmra.mrb[140].mxu1 %vm226_vm3, %v3279_v31  ;;  %v3280_v30 = vld [vmem:[%s4658_s0 + $0x1e0] sm:$0xff]  }
 0x12e   :  { %3034 = vmatprep.mubr.msk.bf16.mxu0 %vm3309_vm0, %v4661_v0  ;;  %3144 = vmatprep.mubr.msk.bf16.mxu1 %vm3309_vm0, %v4661_v0  ;;  %v3281_v31 = vld [vmem:[%s4658_s0 + $0x2a4] sm:$0xff]  }
 0x130   :  { %v3910_v55 = vpop.f32.mrb[36].mxu0  ;;  %v3912_v5 = vpop.f32.mrb[36].mxu1 }
 0x131   :  { %v2808_v28 = vpop.f32.mrb[37].mxu0  ;;  %v2918_v29 = vpop.f32.mrb[37].mxu1 }
 0x132   :  { %v3922_v53 = vpop.f32.mrb[38].mxu0  ;;  %v3924_v54 = vpop.f32.mrb[38].mxu1 }
 0x133   :  { %v2809_v18 = vpop.f32.mrb[39].mxu0  ;;  %v2919_v4 = vpop.f32.mrb[39].mxu1 }
 0x134   :  { %v3282_v4 = vld [vmem:[%s4658_s0 + $0x1e8] sm:$0xff]  }
 0x135   :  { %3035 = vmatmul.mubr.msk.bf16.gmra.mrb[144].mxu0 %vm226_vm3, %v3280_v30  ;;  %3145 = vmatmul.mubr.msk.bf16.gmra.mrb[144].mxu1 %vm226_vm3, %v3281_v31  ;;  %v3283_v30 = vld [vmem:[%s4658_s0 + $0x2ac] sm:$0xff]  }
 0x136   :  { %3038 = vmatprep.mubr.msk.bf16.mxu0 %vm3309_vm0, %v4661_v0  ;;  %3148 = vmatprep.mubr.msk.bf16.mxu1 %vm3309_vm0, %v4661_v0 }
 0x138   :  { %v3934_v28 = vpop.f32.mrb[40].mxu0  ;;  %v3936_v29 = vpop.f32.mrb[40].mxu1 }
 0x139   :  { %v2812_v52 = vpop.f32.mrb[41].mxu0  ;;  %v2922_v18 = vpop.f32.mrb[41].mxu1 }
 0x13a   :  { %v3946_v31 = vpop.f32.mrb[42].mxu0  ;;  %v3948_v48 = vpop.f32.mrb[42].mxu1 }
 0x13b   :  { %v2813_v24 = vpop.f32.mrb[43].mxu0  ;;  %v2923_v16 = vpop.f32.mrb[43].mxu1 }
 0x13c   :  { %v3284_v16 = vld [vmem:[%s4658_s0 + $0x1f0] sm:$0xff]  }
 0x13d   :  { %3039 = vmatmul.mubr.msk.bf16.gmra.mrb[148].mxu0 %vm226_vm3, %v3282_v4  ;;  %3149 = vmatmul.mubr.msk.bf16.gmra.mrb[148].mxu1 %vm226_vm3, %v3283_v30  ;;  %v3285_v4 = vld [vmem:[%s4658_s0 + $0x2b4] sm:$0xff]  }
 0x13e   :  { %3042 = vmatprep.mubr.msk.bf16.mxu0 %vm3309_vm0, %v4661_v0  ;;  %3152 = vmatprep.mubr.msk.bf16.mxu1 %vm3309_vm0, %v4661_v0 }
 0x140   :  { %v3958_v52 = vpop.f32.mrb[44].mxu0  ;;  %v3960_v18 = vpop.f32.mrb[44].mxu1 }
 0x141   :  { %v2816_v40 = vpop.f32.mrb[45].mxu0  ;;  %v2926_v24 = vpop.f32.mrb[45].mxu1 }
 0x142   :  { %v3970_v30 = vpop.f32.mrb[46].mxu0  ;;  %v3972_v63 = vpop.f32.mrb[46].mxu1 }
 0x143   :  { %4713 = vst [vmem:[#allocation2_spill] sm:$0xff] %v3970_v30  ;;  %4714 = vst [vmem:[#allocation3_spill] sm:$0xff] %v3972_v63  ;;  %v2817_v51 = vpop.f32.mrb[47].mxu0  ;;  %v2927_v46 = vpop.f32.mrb[47].mxu1 }
 0x144   :  { %v3286_v46 = vld [vmem:[%s4658_s0 + $0x1f8] sm:$0xff]  }
 0x145   :  { %3043 = vmatmul.mubr.msk.bf16.gmra.mrb[152].mxu0 %vm226_vm3, %v3284_v16  ;;  %3153 = vmatmul.mubr.msk.bf16.gmra.mrb[152].mxu1 %vm226_vm3, %v3285_v4  ;;  %v3287_v16 = vld [vmem:[%s4658_s0 + $0x2bc] sm:$0xff]  }
 0x146   :  { %3046 = vmatprep.mubr.msk.bf16.mxu0 %vm3309_vm0, %v4661_v0  ;;  %3156 = vmatprep.mubr.msk.bf16.mxu1 %vm3309_vm0, %v4661_v0 }
 0x148   :  { %v3982_v40 = vpop.f32.mrb[48].mxu0  ;;  %v3984_v24 = vpop.f32.mrb[48].mxu1 }
 0x149   :  { %4715 = vst [vmem:[#allocation4_spill] sm:$0xff] %v3982_v40  ;;  %4716 = vst [vmem:[#allocation5_spill] sm:$0xff] %v3984_v24  ;;  %v2820_v58 = vpop.f32.mrb[49].mxu0  ;;  %v2930_v51 = vpop.f32.mrb[49].mxu1 }
 0x14a   :  { %v3994_v4 = vpop.f32.mrb[50].mxu0  ;;  %v3996_v39 = vpop.f32.mrb[50].mxu1 }
 0x14b   :  { %4717 = vst [vmem:[#allocation6_spill] sm:$0xff] %v3994_v4  ;;  %4718 = vst [vmem:[#allocation7_spill] sm:$0xff] %v3996_v39  ;;  %v2821_v27 = vpop.f32.mrb[51].mxu0  ;;  %v2931_v22 = vpop.f32.mrb[51].mxu1 }
 0x14c   :  { %v3288_v22 = vld [vmem:[%s4658_s0 + $0x200] sm:$0xff]  }
 0x14d   :  { %3047 = vmatmul.mubr.msk.bf16.gmra.mrb[156].mxu0 %vm226_vm3, %v3286_v46  ;;  %3157 = vmatmul.mubr.msk.bf16.gmra.mrb[156].mxu1 %vm226_vm3, %v3287_v16  ;;  %v3289_v46 = vld [vmem:[%s4658_s0 + $0x2c4] sm:$0xff]  }
 0x14e   :  { %3050 = vmatprep.mubr.msk.bf16.mxu0 %vm3309_vm0, %v4661_v0  ;;  %3160 = vmatprep.mubr.msk.bf16.mxu1 %vm3309_vm0, %v4661_v0 }
 0x150   :  { %v4006_v58 = vpop.f32.mrb[52].mxu0  ;;  %v4008_v51 = vpop.f32.mrb[52].mxu1 }
 0x151   :  { %4719 = vst [vmem:[#allocation8_spill] sm:$0xff] %v4006_v58  ;;  %4720 = vst [vmem:[#allocation9_spill] sm:$0xff] %v4008_v51  ;;  %v2824_v34 = vpop.f32.mrb[53].mxu0  ;;  %v2934_v27 = vpop.f32.mrb[53].mxu1 }
 0x152   :  { %v4018_v16 = vpop.f32.mrb[54].mxu0  ;;  %v4020_v15 = vpop.f32.mrb[54].mxu1  ;;  %v4723_v34 = vmov 0.0  }
 0x153   :  { %4721 = vst [vmem:[#allocation10_spill] sm:$0xff] %v4018_v16  ;;  %4722 = vst [vmem:[#allocation11_spill] sm:$0xff] %v4020_v15  ;;  %v2825_v3 = vpop.f32.mrb[55].mxu0  ;;  %v2935_v0 = vpop.f32.mrb[55].mxu1 }
 0x154   :  { %v3290_v0 = vld [vmem:[%s4658_s0 + $0x208] sm:$0xff]  }
 0x155   :  { %3051 = vmatmul.mubr.msk.bf16.gmra.mrb[160].mxu0 %vm226_vm3, %v3288_v22  ;;  %3161 = vmatmul.mubr.msk.bf16.gmra.mrb[160].mxu1 %vm226_vm3, %v3289_v46  ;;  %v3291_v22 = vld [vmem:[%s4658_s0 + $0x2cc] sm:$0xff]  }
 0x156   :  { %3054 = vmatprep.mubr.msk.bf16.mxu0 %vm3309_vm0, %v4723_v34  ;;  %3164 = vmatprep.mubr.msk.bf16.mxu1 %vm3309_vm0, %v4723_v34 }
 0x158   :  { %v4030_v27 = vpop.f32.mrb[56].mxu0  ;;  %v4032_v6 = vpop.f32.mrb[56].mxu1 }
 0x159   :  { %4724 = vst [vmem:[#allocation12_spill] sm:$0xff] %v4030_v27  ;;  %4725 = vst [vmem:[#allocation13_spill] sm:$0xff] %v4032_v6  ;;  %v2828_v10 = vpop.f32.mrb[57].mxu0  ;;  %v2938_v3 = vpop.f32.mrb[57].mxu1 }
 0x15a   :  { %v4042_v46 = vpop.f32.mrb[58].mxu0  ;;  %v4044_v15 = vpop.f32.mrb[58].mxu1 }
 0x15b   :  { %4726 = vst [vmem:[#allocation14_spill] sm:$0xff] %v4042_v46  ;;  %4727 = vst [vmem:[#allocation15_spill] sm:$0xff] %v4044_v15  ;;  %v2829_v58 = vpop.f32.mrb[59].mxu0  ;;  %v2939_v39 = vpop.f32.mrb[59].mxu1 }
 0x15c   :  { %v3292_v39 = vld [vmem:[%s4658_s0 + $0x210] sm:$0xff]  }
 0x15d   :  { %3055 = vmatmul.mubr.msk.bf16.gmra.mrb[164].mxu0 %vm226_vm3, %v3290_v0  ;;  %3165 = vmatmul.mubr.msk.bf16.gmra.mrb[164].mxu1 %vm226_vm3, %v3291_v22  ;;  %v3293_v0 = vld [vmem:[%s4658_s0 + $0x2d4] sm:$0xff]  }
 0x15e   :  { %3058 = vmatprep.mubr.msk.bf16.mxu0 %vm3309_vm0, %v4723_v34  ;;  %3168 = vmatprep.mubr.msk.bf16.mxu1 %vm3309_vm0, %v4723_v34 }
 0x160   :  { %v4054_v10 = vpop.f32.mrb[60].mxu0  ;;  %v4056_v3 = vpop.f32.mrb[60].mxu1 }
 0x161   :  { %4728 = vst [vmem:[#allocation16_spill] sm:$0xff] %v4054_v10  ;;  %4729 = vst [vmem:[#allocation17_spill] sm:$0xff] %v4056_v3  ;;  %v2832_v16 = vpop.f32.mrb[61].mxu0  ;;  %v2942_v58 = vpop.f32.mrb[61].mxu1 }
 0x162   :  { %v4066_v22 = vpop.f32.mrb[62].mxu0  ;;  %v4068_v15 = vpop.f32.mrb[62].mxu1 }
 0x163   :  { %4730 = vst [vmem:[#allocation18_spill] sm:$0xff] %v4066_v22  ;;  %4731 = vst [vmem:[#allocation19_spill] sm:$0xff] %v4068_v15  ;;  %v2833_v6 = vpop.f32.mrb[63].mxu0  ;;  %v2943_v27 = vpop.f32.mrb[63].mxu1 }
 0x164   :  { %v3294_v27 = vld [vmem:[%s4658_s0 + $0x218] sm:$0xff]  }
 0x165   :  { %3059 = vmatmul.mubr.msk.bf16.gmra.mrb[168].mxu0 %vm226_vm3, %v3292_v39  ;;  %3169 = vmatmul.mubr.msk.bf16.gmra.mrb[168].mxu1 %vm226_vm3, %v3293_v0  ;;  %v3295_v39 = vld [vmem:[%s4658_s0 + $0x2dc] sm:$0xff]  }
 0x166   :  { %3062 = vmatprep.mubr.msk.bf16.mxu0 %vm3309_vm0, %v4723_v34  ;;  %3172 = vmatprep.mubr.msk.bf16.mxu1 %vm3309_vm0, %v4723_v34 }
 0x168   :  { %v4078_v16 = vpop.f32.mrb[64].mxu0  ;;  %v4080_v58 = vpop.f32.mrb[64].mxu1 }
 0x169   :  { %4732 = vst [vmem:[#allocation20_spill] sm:$0xff] %v4078_v16  ;;  %4733 = vst [vmem:[#allocation21_spill] sm:$0xff] %v4080_v58  ;;  %v2836_v46 = vpop.f32.mrb[65].mxu0  ;;  %v2946_v6 = vpop.f32.mrb[65].mxu1 }
 0x16a   :  { %v4090_v0 = vpop.f32.mrb[66].mxu0  ;;  %v4092_v15 = vpop.f32.mrb[66].mxu1 }
 0x16b   :  { %4734 = vst [vmem:[#allocation22_spill] sm:$0xff] %v4090_v0  ;;  %4735 = vst [vmem:[#allocation23_spill] sm:$0xff] %v4092_v15  ;;  %v2837_v3 = vpop.f32.mrb[67].mxu0  ;;  %v2947_v10 = vpop.f32.mrb[67].mxu1 }
 0x16c   :  { %v3296_v10 = vld [vmem:[%s4658_s0 + $0x220] sm:$0xff]  }
 0x16d   :  { %3063 = vmatmul.mubr.msk.bf16.gmra.mrb[172].mxu0 %vm226_vm3, %v3294_v27  ;;  %3173 = vmatmul.mubr.msk.bf16.gmra.mrb[172].mxu1 %vm226_vm3, %v3295_v39  ;;  %v3297_v27 = vld [vmem:[%s4658_s0 + $0x2e4] sm:$0xff]  }
 0x16e   :  { %3066 = vmatprep.mubr.msk.bf16.mxu0 %vm3309_vm0, %v4723_v34  ;;  %3176 = vmatprep.mubr.msk.bf16.mxu1 %vm3309_vm0, %v4723_v34 }
 0x170   :  { %v4102_v46 = vpop.f32.mrb[68].mxu0  ;;  %v4104_v6 = vpop.f32.mrb[68].mxu1 }
 0x171   :  { %4736 = vst [vmem:[#allocation24_spill] sm:$0xff] %v4102_v46  ;;  %4737 = vst [vmem:[#allocation25_spill] sm:$0xff] %v4104_v6  ;;  %v2840_v22 = vpop.f32.mrb[69].mxu0  ;;  %v2950_v3 = vpop.f32.mrb[69].mxu1 }
 0x172   :  { %v4114_v39 = vpop.f32.mrb[70].mxu0  ;;  %v4116_v15 = vpop.f32.mrb[70].mxu1 }
 0x173   :  { %4738 = vst [vmem:[#allocation26_spill] sm:$0xff] %v4114_v39  ;;  %4739 = vst [vmem:[#allocation27_spill] sm:$0xff] %v4116_v15  ;;  %v2841_v58 = vpop.f32.mrb[71].mxu0  ;;  %v2951_v16 = vpop.f32.mrb[71].mxu1 }
 0x174   :  { %v3298_v16 = vld [vmem:[%s4658_s0 + $0x228] sm:$0xff]  }
 0x175   :  { %3067 = vmatmul.mubr.msk.bf16.gmra.mrb[176].mxu0 %vm226_vm3, %v3296_v10  ;;  %3177 = vmatmul.mubr.msk.bf16.gmra.mrb[176].mxu1 %vm226_vm3, %v3297_v27  ;;  %v3299_v10 = vld [vmem:[%s4658_s0 + $0x2ec] sm:$0xff]  }
 0x176   :  { %3070 = vmatprep.mubr.msk.bf16.mxu0 %vm3309_vm0, %v4723_v34  ;;  %3180 = vmatprep.mubr.msk.bf16.mxu1 %vm3309_vm0, %v4723_v34 }
 0x178   :  { %v4126_v22 = vpop.f32.mrb[72].mxu0  ;;  %v4128_v3 = vpop.f32.mrb[72].mxu1 }
 0x179   :  { %4740 = vst [vmem:[#allocation28_spill] sm:$0xff] %v4126_v22  ;;  %4741 = vst [vmem:[#allocation29_spill] sm:$0xff] %v4128_v3  ;;  %v2844_v0 = vpop.f32.mrb[73].mxu0  ;;  %v2954_v58 = vpop.f32.mrb[73].mxu1 }
 0x17a   :  { %v4138_v27 = vpop.f32.mrb[74].mxu0  ;;  %v4140_v15 = vpop.f32.mrb[74].mxu1 }
 0x17b   :  { %4742 = vst [vmem:[#allocation30_spill] sm:$0xff] %v4138_v27  ;;  %4743 = vst [vmem:[#allocation31_spill] sm:$0xff] %v4140_v15  ;;  %v2845_v6 = vpop.f32.mrb[75].mxu0  ;;  %v2955_v46 = vpop.f32.mrb[75].mxu1 }
 0x17c   :  { %v3300_v46 = vld [vmem:[%s4658_s0 + $0x230] sm:$0xff]  }
 0x17d   :  { %3071 = vmatmul.mubr.msk.bf16.gmra.mrb[180].mxu0 %vm226_vm3, %v3298_v16  ;;  %3181 = vmatmul.mubr.msk.bf16.gmra.mrb[180].mxu1 %vm226_vm3, %v3299_v10  ;;  %v3301_v16 = vld [vmem:[%s4658_s0 + $0x2f4] sm:$0xff]  }
 0x17e   :  { %3074 = vmatprep.mubr.msk.bf16.mxu0 %vm3309_vm0, %v4723_v34  ;;  %3184 = vmatprep.mubr.msk.bf16.mxu1 %vm3309_vm0, %v4723_v34 }
 0x180   :  { %v4150_v0 = vpop.f32.mrb[76].mxu0  ;;  %v4152_v58 = vpop.f32.mrb[76].mxu1 }
 0x181   :  { %4744 = vst [vmem:[#allocation32_spill] sm:$0xff] %v4150_v0  ;;  %4745 = vst [vmem:[#allocation33_spill] sm:$0xff] %v4152_v58  ;;  %v2848_v39 = vpop.f32.mrb[77].mxu0  ;;  %v2958_v6 = vpop.f32.mrb[77].mxu1 }
 0x182   :  { %v4162_v10 = vpop.f32.mrb[78].mxu0  ;;  %v4164_v15 = vpop.f32.mrb[78].mxu1 }
 0x183   :  { %4746 = vst [vmem:[#allocation34_spill] sm:$0xff] %v4162_v10  ;;  %4747 = vst [vmem:[#allocation35_spill] sm:$0xff] %v4164_v15  ;;  %v2849_v3 = vpop.f32.mrb[79].mxu0  ;;  %v2959_v22 = vpop.f32.mrb[79].mxu1 }
 0x184   :  { %v3302_v22 = vld [vmem:[%s4658_s0 + $0x238] sm:$0xff]  }
 0x185   :  { %3075 = vmatmul.mubr.msk.bf16.gmra.mrb[184].mxu0 %vm226_vm3, %v3300_v46  ;;  %3185 = vmatmul.mubr.msk.bf16.gmra.mrb[184].mxu1 %vm226_vm3, %v3301_v16  ;;  %v3303_v46 = vld [vmem:[%s4658_s0 + $0x2fc] sm:$0xff]  }
 0x186   :  { %3078 = vmatprep.mubr.msk.bf16.mxu0 %vm3309_vm0, %v4723_v34  ;;  %3188 = vmatprep.mubr.msk.bf16.mxu1 %vm3309_vm0, %v4723_v34 }
 0x188   :  { %v4174_v39 = vpop.f32.mrb[80].mxu0  ;;  %v4176_v6 = vpop.f32.mrb[80].mxu1 }
 0x189   :  { %4748 = vst [vmem:[#allocation36_spill] sm:$0xff] %v4174_v39  ;;  %4749 = vst [vmem:[#allocation37_spill] sm:$0xff] %v4176_v6  ;;  %v2852_v27 = vpop.f32.mrb[81].mxu0  ;;  %v2962_v3 = vpop.f32.mrb[81].mxu1 }
 0x18a   :  { %v4186_v16 = vpop.f32.mrb[82].mxu0  ;;  %v4188_v15 = vpop.f32.mrb[82].mxu1 }
 0x18b   :  { %4750 = vst [vmem:[#allocation38_spill] sm:$0xff] %v4186_v16  ;;  %4751 = vst [vmem:[#allocation39_spill] sm:$0xff] %v4188_v15  ;;  %v2853_v58 = vpop.f32.mrb[83].mxu0  ;;  %v2963_v0 = vpop.f32.mrb[83].mxu1 }
 0x18c   :  { %v3304_v0 = vld [vmem:[%s4658_s0 + $0x240] sm:$0xff]  }
 0x18d   :  { %3079 = vmatmul.mubr.msk.bf16.gmra.mrb[188].mxu0 %vm226_vm3, %v3302_v22  ;;  %3189 = vmatmul.mubr.msk.bf16.gmra.mrb[188].mxu1 %vm226_vm3, %v3303_v46  ;;  %v3305_v22 = vld [vmem:[%s4658_s0 + $0x304] sm:$0xff]  }
 0x18e   :  { %3082 = vmatprep.mubr.msk.bf16.mxu0 %vm3309_vm0, %v4723_v34  ;;  %3192 = vmatprep.mubr.msk.bf16.mxu1 %vm3309_vm0, %v4723_v34 }
 0x190   :  { %v4198_v27 = vpop.f32.mrb[84].mxu0  ;;  %v4200_v3 = vpop.f32.mrb[84].mxu1 }
 0x191   :  { %4752 = vst [vmem:[#allocation40_spill] sm:$0xff] %v4198_v27  ;;  %4753 = vst [vmem:[#allocation41_spill] sm:$0xff] %v4200_v3  ;;  %v2856_v10 = vpop.f32.mrb[85].mxu0  ;;  %v2966_v58 = vpop.f32.mrb[85].mxu1 }
 0x192   :  { %v4210_v46 = vpop.f32.mrb[86].mxu0  ;;  %v4212_v15 = vpop.f32.mrb[86].mxu1 }
 0x193   :  { %4754 = vst [vmem:[#allocation42_spill] sm:$0xff] %v4210_v46  ;;  %4755 = vst [vmem:[#allocation43_spill] sm:$0xff] %v4212_v15  ;;  %v2857_v6 = vpop.f32.mrb[87].mxu0  ;;  %v2967_v39 = vpop.f32.mrb[87].mxu1 }
 0x194   :  { %v3306_v39 = vld [vmem:[%s4658_s0 + $0x248] ss:$0 sps:$4 sm:$0xff]  }
 0x195   :  { %3083 = vmatmul.mubr.msk.bf16.gmra.mrb[192].mxu0 %vm226_vm3, %v3304_v0  ;;  %3193 = vmatmul.mubr.msk.bf16.gmra.mrb[192].mxu1 %vm226_vm3, %v3305_v22  ;;  %v3307_v0 = vld [vmem:[%s4658_s0 + $0x30c] ss:$0 sps:$4 sm:$0xff]  }
 0x196   :  { %3086 = vmatprep.mubr.msk.bf16.mxu0 %vm3309_vm0, %v4723_v34  ;;  %3196 = vmatprep.mubr.msk.bf16.mxu1 %vm3309_vm0, %v4723_v34 }
 0x198   :  { %v4222_v10 = vpop.f32.mrb[88].mxu0  ;;  %v4224_v58 = vpop.f32.mrb[88].mxu1 }
 0x199   :  { %4756 = vst [vmem:[#allocation44_spill] sm:$0xff] %v4222_v10  ;;  %4757 = vst [vmem:[#allocation45_spill] sm:$0xff] %v4224_v58  ;;  %v2860_v16 = vpop.f32.mrb[89].mxu0  ;;  %v2970_v6 = vpop.f32.mrb[89].mxu1 }
 0x19a   :  { %v4234_v22 = vpop.f32.mrb[90].mxu0  ;;  %v4236_v34 = vpop.f32.mrb[90].mxu1 }
 0x19b   :  { %4758 = vst [vmem:[#allocation46_spill] sm:$0xff] %v4234_v22  ;;  %4759 = vst [vmem:[#allocation47_spill] sm:$0xff] %v4236_v34  ;;  %v2861_v46 = vpop.f32.mrb[91].mxu0  ;;  %v2971_v3 = vpop.f32.mrb[91].mxu1 }
 0x19d   :  { %3087 = vmatmul.mubr.msk.bf16.gmra.mrb[196].mxu0 %vm226_vm3, %v3306_v39  ;;  %3197 = vmatmul.mubr.msk.bf16.gmra.mrb[196].mxu1 %vm226_vm3, %v3307_v0 }
 0x1a0   :  { %v4242_v16 = vpop.f32.mrb[92].mxu0  ;;  %v4244_v6 = vpop.f32.mrb[92].mxu1 }
 0x1a1   :  { %4760 = vst [vmem:[#allocation48_spill] sm:$0xff] %v4242_v16  ;;  %4761 = vst [vmem:[#allocation49_spill] sm:$0xff] %v4244_v6  ;;  %v2864_v58 = vpop.f32.mrb[93].mxu0  ;;  %v2974_v10 = vpop.f32.mrb[93].mxu1 }
 0x1a2   :  { %v4248_v27 = vpop.f32.mrb[94].mxu0  ;;  %v4250_v4 = vpop.f32.mrb[94].mxu1 }
 0x1a3   :  { %4762 = vst [vmem:[#allocation50_spill] sm:$0xff] %v4250_v4  ;;  %v2865_v46 = vpop.f32.mrb[95].mxu0  ;;  %v2975_v39 = vpop.f32.mrb[95].mxu1 }
 0x1a4   :  { %v4263_v46 = vld [vmem:[%s4659_s2] ss:$0 sm:$0xff] }
 0x1a8   :  { %v4254_v15 = vpop.f32.mrb[96].mxu0  ;;  %v4256_v0 = vpop.f32.mrb[96].mxu1 }
 0x1a9   :  { %4763 = vst [vmem:[#allocation51_spill] sm:$0xff] %v4256_v0  ;;  %v2868_v22 = vpop.f32.mrb[97].mxu0  ;;  %v2978_v51 = vpop.f32.mrb[97].mxu1 }
 0x1aa   :  { %v538_v58 = vpop.f32.mrb[98].mxu0  ;;  %v1018_v10 = vpop.f32.mrb[98].mxu1  ;;  %v4764_v22 = vmax.f32 %v3694_v1, %v3696_v2 }
 0x1ab   :  { %v2869_v6 = vpop.f32.mrb[99].mxu0  ;;  %v2979_v16 = vpop.f32.mrb[99].mxu1 }
 0x1b0   :  { %v1303_v24 = vpop.f32.mrb[100].mxu0  ;;  %v1783_v40 = vpop.f32.mrb[100].mxu1 }
 0x1b1   :  { %v2030_v63 = vmax.f32 %v1303_v24, %v1783_v40  ;;  %v2992_v30 = vpop.f32.mrb[101].mxu0  ;;  %v3102_v3 = vpop.f32.mrb[101].mxu1 }
 0x1b2   :  { %v1306_v39 = vpop.f32.mrb[102].mxu0  ;;  %v1786_v4 = vpop.f32.mrb[102].mxu1  ;;  %v4765_v30 = vmax.f32 %v3706_v8, %v3708_v9  ;;  %v4766_v8 = vmax.f32 %v3718_v13, %v3720_v14 }
 0x1b3   :  { %v2079_v51 = vmax.f32 %v4764_v22, %v2030_v63  ;;  %v2031_v58 = vmax.f32 %v1306_v39, %v1786_v4  ;;  %v2993_v10 = vpop.f32.mrb[103].mxu0  ;;  %v3103_v6 = vpop.f32.mrb[103].mxu1 }
 0x1b5   :  { %v2135_v16 = vadd.f32 %v4263_v46, %v2079_v51  ;;  %v2080_v40 = vmax.f32 %v4765_v30, %v2031_v58 }
 0x1b7   :  { %v2184_v24 = vmax.f32 %v2135_v16, 0.0  ;;  %v2136_v3 = vadd.f32 %v4263_v46, %v2080_v40 }
 0x1b8   :  { %v1311_v34 = vpop.f32.mrb[104].mxu0  ;;  %v1791_v0 = vpop.f32.mrb[104].mxu1 }
 0x1b9   :  { %2234 = vst.msk [vmem:[%s4660_s3] sm:$0xff] %vm2233_vm4, %v2184_v24  ;;  %v2185_v1 = vmax.f32 %v2136_v3, 0.0  ;;  %v2032_v2 = vmax.f32 %v1311_v34, %v1791_v0  ;;  %v2996_v63 = vpop.f32.mrb[105].mxu0  ;;  %v3106_v4 = vpop.f32.mrb[105].mxu1  ;;  %v4767_v34 = vmax.f32 %v3730_v20, %v3732_v21  ;;  %v4768_v20 = vmax.f32 %v3742_v25, %v3744_v26 }
 0x1ba   :  { %v1314_v39 = vpop.f32.mrb[106].mxu0  ;;  %v1794_v22 = vpop.f32.mrb[106].mxu1 }
 0x1bb   :  { %2235 = vst.msk [vmem:[%s4660_s3 + $0x8] sm:$0xff] %vm2233_vm4, %v2185_v1  ;;  %v2081_v9 = vmax.f32 %v4766_v8, %v2032_v2  ;;  %v2033_v51 = vmax.f32 %v1314_v39, %v1794_v22  ;;  %v2997_v58 = vpop.f32.mrb[107].mxu0  ;;  %v3107_v10 = vpop.f32.mrb[107].mxu1 }
 0x1bd   :  { %v2137_v6 = vadd.f32 %v4263_v46, %v2081_v9  ;;  %v2082_v0 = vmax.f32 %v4767_v34, %v2033_v51  ;;  %v4769_v9 = vmax.f32 %v3754_v32, %v3756_v33  ;;  %v4770_v32 = vmax.f32 %v3766_v37, %v3768_v38 }
 0x1bf   :  { %v2186_v16 = vmax.f32 %v2137_v6, 0.0  ;;  %v2138_v30 = vadd.f32 %v4263_v46, %v2082_v0 }
 0x1c0   :  { %v1319_v40 = vpop.f32.mrb[108].mxu0  ;;  %v1799_v24 = vpop.f32.mrb[108].mxu1 }
 0x1c1   :  { %2236 = vst.msk [vmem:[%s4660_s3 + $0x10] sm:$0xff] %vm2233_vm4, %v2186_v16  ;;  %v2187_v13 = vmax.f32 %v2138_v30, 0.0  ;;  %v2034_v14 = vmax.f32 %v1319_v40, %v1799_v24  ;;  %v3000_v3 = vpop.f32.mrb[109].mxu0  ;;  %v3110_v1 = vpop.f32.mrb[109].mxu1 }
 0x1c2   :  { %v1322_v2 = vpop.f32.mrb[110].mxu0  ;;  %v1802_v63 = vpop.f32.mrb[110].mxu1  ;;  %v4771_v1 = vmax.f32 %v3778_v44, %v3780_v45  ;;  %v4772_v44 = vmax.f32 %v3790_v49, %v3792_v50 }
 0x1c3   :  { %2237 = vst.msk [vmem:[%s4660_s3 + $0x18] sm:$0xff] %vm2233_vm4, %v2187_v13  ;;  %v2083_v21 = vmax.f32 %v4768_v20, %v2034_v14  ;;  %v2035_v4 = vmax.f32 %v1322_v2, %v1802_v63  ;;  %v3001_v39 = vpop.f32.mrb[111].mxu0  ;;  %v3111_v22 = vpop.f32.mrb[111].mxu1 }
 0x1c5   :  { %v2139_v8 = vadd.f32 %v4263_v46, %v2083_v21  ;;  %v2084_v51 = vmax.f32 %v4769_v9, %v2035_v4 }
 0x1c7   :  { %v2188_v58 = vmax.f32 %v2139_v8, 0.0  ;;  %v2140_v10 = vadd.f32 %v4263_v46, %v2084_v51 }
 0x1c8   :  { %v1327_v6 = vpop.f32.mrb[112].mxu0  ;;  %v1807_v34 = vpop.f32.mrb[112].mxu1 }
 0x1c9   :  { %2238 = vst.msk [vmem:[%s4660_s3 + $0x20] sm:$0xff] %vm2233_vm4, %v2188_v58  ;;  %v2189_v25 = vmax.f32 %v2140_v10, 0.0  ;;  %v2036_v26 = vmax.f32 %v1327_v6, %v1807_v34  ;;  %v3004_v0 = vpop.f32.mrb[113].mxu0  ;;  %v3114_v16 = vpop.f32.mrb[113].mxu1  ;;  %v4773_v34 = vmax.f32 %v3802_v56, %v3804_v57  ;;  %v4774_v56 = vmax.f32 %v3814_v61, %v3816_v62 }
 0x1ca   :  { %v1330_v30 = vpop.f32.mrb[114].mxu0  ;;  %v1810_v40 = vpop.f32.mrb[114].mxu1 }
 0x1cb   :  { %2239 = vst.msk [vmem:[%s4660_s3 + $0x28] sm:$0xff] %vm2233_vm4, %v2189_v25  ;;  %v2085_v33 = vmax.f32 %v4770_v32, %v2036_v26  ;;  %v2037_v24 = vmax.f32 %v1330_v30, %v1810_v40  ;;  %v3005_v13 = vpop.f32.mrb[115].mxu0  ;;  %v3115_v14 = vpop.f32.mrb[115].mxu1 }
 0x1cd   :  { %v2141_v3 = vadd.f32 %v4263_v46, %v2085_v33  ;;  %v2086_v2 = vmax.f32 %v4771_v1, %v2037_v24 }
 0x1cf   :  { %v2190_v63 = vmax.f32 %v2141_v3, 0.0  ;;  %v2142_v20 = vadd.f32 %v4263_v46, %v2086_v2  ;;  %v4775_v2 = vmax.f32 %v3826_v11, %v3828_v12  ;;  %v4776_v11 = vmax.f32 %v3838_v19, %v3840_v23 }
 0x1d0   :  { %v1335_v21 = vpop.f32.mrb[116].mxu0  ;;  %v1815_v4 = vpop.f32.mrb[116].mxu1 }
 0x1d1   :  { %2240 = vst.msk [vmem:[%s4660_s3 + $0x30] sm:$0xff] %vm2233_vm4, %v2190_v63  ;;  %v2191_v37 = vmax.f32 %v2142_v20, 0.0  ;;  %v2038_v38 = vmax.f32 %v1335_v21, %v1815_v4  ;;  %v3008_v39 = vpop.f32.mrb[117].mxu0  ;;  %v3118_v22 = vpop.f32.mrb[117].mxu1 }
 0x1d2   :  { %v1338_v8 = vpop.f32.mrb[118].mxu0  ;;  %v1818_v9 = vpop.f32.mrb[118].mxu1 }
 0x1d3   :  { %2241 = vst.msk [vmem:[%s4660_s3 + $0x38] sm:$0xff] %vm2233_vm4, %v2191_v37  ;;  %v2087_v45 = vmax.f32 %v4772_v44, %v2038_v38  ;;  %v2039_v51 = vmax.f32 %v1338_v8, %v1818_v9  ;;  %v3009_v58 = vpop.f32.mrb[119].mxu0  ;;  %v3119_v10 = vpop.f32.mrb[119].mxu1 }
 0x1d4   :  { %v4777_v58 = vmax.f32 %v3850_v35, %v3852_v36  ;;  %v4778_v35 = vmax.f32 %v3862_v43, %v3864_v47 }
 0x1d5   :  { %v2143_v6 = vadd.f32 %v4263_v46, %v2087_v45  ;;  %v2088_v25 = vmax.f32 %v4773_v34, %v2039_v51 }
 0x1d7   :  { %v2192_v26 = vmax.f32 %v2143_v6, 0.0  ;;  %v2144_v0 = vadd.f32 %v4263_v46, %v2088_v25 }
 0x1d8   :  { %v1343_v16 = vpop.f32.mrb[120].mxu0  ;;  %v1823_v30 = vpop.f32.mrb[120].mxu1 }
 0x1d9   :  { %2242 = vst.msk [vmem:[%s4660_s3 + $0x40] sm:$0xff] %vm2233_vm4, %v2192_v26  ;;  %v2193_v49 = vmax.f32 %v2144_v0, 0.0  ;;  %v2040_v50 = vmax.f32 %v1343_v16, %v1823_v30  ;;  %v3012_v40 = vpop.f32.mrb[121].mxu0  ;;  %v3122_v32 = vpop.f32.mrb[121].mxu1 }
 0x1da   :  { %v1346_v33 = vpop.f32.mrb[122].mxu0  ;;  %v1826_v24 = vpop.f32.mrb[122].mxu1 }
 0x1db   :  { %2243 = vst.msk [vmem:[%s4660_s3 + $0x48] sm:$0xff] %vm2233_vm4, %v2193_v49  ;;  %v2089_v57 = vmax.f32 %v4774_v56, %v2040_v50  ;;  %v2041_v13 = vmax.f32 %v1346_v33, %v1826_v24  ;;  %v3013_v14 = vpop.f32.mrb[123].mxu0  ;;  %v3123_v3 = vpop.f32.mrb[123].mxu1  ;;  %v4779_v24 = vmax.f32 %v3874_v59, %v3876_v60  ;;  %v4780_v59 = vmax.f32 %v3886_v7, %v3888_v17 }
 0x1dd   :  { %v2145_v1 = vadd.f32 %v4263_v46, %v2089_v57  ;;  %v2090_v63 = vmax.f32 %v4775_v2, %v2041_v13 }
 0x1df   :  { %v2194_v20 = vmax.f32 %v2145_v1, 0.0  ;;  %v2146_v21 = vadd.f32 %v4263_v46, %v2090_v63 }
 0x1e0   :  { %v1351_v4 = vpop.f32.mrb[124].mxu0  ;;  %v1831_v37 = vpop.f32.mrb[124].mxu1 }
 0x1e1   :  { %2244 = vst.msk [vmem:[%s4660_s3 + $0x50] sm:$0xff] %vm2233_vm4, %v2194_v20  ;;  %v2195_v61 = vmax.f32 %v2146_v21, 0.0  ;;  %v2042_v62 = vmax.f32 %v1351_v4, %v1831_v37  ;;  %v3016_v38 = vpop.f32.mrb[125].mxu0  ;;  %v3126_v39 = vpop.f32.mrb[125].mxu1 }
 0x1e2   :  { %v1354_v22 = vpop.f32.mrb[126].mxu0  ;;  %v1834_v8 = vpop.f32.mrb[126].mxu1 }
 0x1e3   :  { %2245 = vst.msk [vmem:[%s4660_s3 + $0x58] sm:$0xff] %vm2233_vm4, %v2195_v61  ;;  %v2091_v12 = vmax.f32 %v4776_v11, %v2042_v62  ;;  %v2043_v9 = vmax.f32 %v1354_v22, %v1834_v8  ;;  %v3017_v44 = vpop.f32.mrb[127].mxu0  ;;  %v3127_v45 = vpop.f32.mrb[127].mxu1  ;;  %v4781_v62 = vmax.f32 %v3898_v41, %v3900_v42  ;;  %v4782_v41 = vmax.f32 %v3910_v55, %v3912_v5 }
 0x1e5   :  { %v2147_v51 = vadd.f32 %v4263_v46, %v2091_v12  ;;  %v2092_v10 = vmax.f32 %v4777_v58, %v2043_v9 }
 0x1e7   :  { %v2196_v6 = vmax.f32 %v2147_v51, 0.0  ;;  %v2148_v34 = vadd.f32 %v4263_v46, %v2092_v10 }
 0x1e8   :  { %v1359_v25 = vpop.f32.mrb[128].mxu0  ;;  %v1839_v26 = vpop.f32.mrb[128].mxu1 }
 0x1e9   :  { %2246 = vst.msk [vmem:[%s4660_s3 + $0x60] sm:$0xff] %vm2233_vm4, %v2196_v6  ;;  %v2197_v19 = vmax.f32 %v2148_v34, 0.0  ;;  %v2044_v23 = vmax.f32 %v1359_v25, %v1839_v26  ;;  %v3020_v0 = vpop.f32.mrb[129].mxu0  ;;  %v3130_v16 = vpop.f32.mrb[129].mxu1  ;;  %v4783_v34 = vmax.f32 %v3922_v53, %v3924_v54  ;;  %v4784_v53 = vmax.f32 %v3934_v28, %v3936_v29 }
 0x1ea   :  { %v1362_v30 = vpop.f32.mrb[130].mxu0  ;;  %v1842_v49 = vpop.f32.mrb[130].mxu1 }
 0x1eb   :  { %2247 = vst.msk [vmem:[%s4660_s3 + $0x68] sm:$0xff] %vm2233_vm4, %v2197_v19  ;;  %v2093_v36 = vmax.f32 %v4778_v35, %v2044_v23  ;;  %v2045_v50 = vmax.f32 %v1362_v30, %v1842_v49  ;;  %v3021_v40 = vpop.f32.mrb[131].mxu0  ;;  %v3131_v32 = vpop.f32.mrb[131].mxu1 }
 0x1ed   :  { %v2149_v33 = vadd.f32 %v4263_v46, %v2093_v36  ;;  %v2094_v56 = vmax.f32 %v4779_v24, %v2045_v50 }
 0x1ef   :  { %v2198_v57 = vmax.f32 %v2149_v33, 0.0  ;;  %v2150_v13 = vadd.f32 %v4263_v46, %v2094_v56  ;;  %v4785_v33 = vmax.f32 %v3946_v31, %v3948_v48  ;;  %v4786_v48 = vmax.f32 %v3958_v52, %v3960_v18 }
 0x1f0   :  { %v1367_v14 = vpop.f32.mrb[132].mxu0  ;;  %v1847_v3 = vpop.f32.mrb[132].mxu1 }
 0x1f1   :  { %2248 = vst.msk [vmem:[%s4660_s3 + $0x70] sm:$0xff] %vm2233_vm4, %v2198_v57  ;;  %v2199_v43 = vmax.f32 %v2150_v13, 0.0  ;;  %v2046_v47 = vmax.f32 %v1367_v14, %v1847_v3  ;;  %v3024_v1 = vpop.f32.mrb[133].mxu0  ;;  %v3134_v2 = vpop.f32.mrb[133].mxu1 }
 0x1f2   :  { %v1370_v63 = vpop.f32.mrb[134].mxu0  ;;  %v1850_v20 = vpop.f32.mrb[134].mxu1 }
 0x1f3   :  { %2249 = vst.msk [vmem:[%s4660_s3 + $0x78] sm:$0xff] %vm2233_vm4, %v2199_v43  ;;  %v2095_v60 = vmax.f32 %v4780_v59, %v2046_v47  ;;  %v2047_v21 = vmax.f32 %v1370_v63, %v1850_v20  ;;  %v3025_v4 = vpop.f32.mrb[135].mxu0  ;;  %v3135_v37 = vpop.f32.mrb[135].mxu1 }
 0x1f5   :  { %v2151_v61 = vadd.f32 %v4263_v46, %v2095_v60  ;;  %v2096_v38 = vmax.f32 %v4781_v62, %v2047_v21  ;;  %v4787_v60 = vld [vmem:[#allocation2_spill] sm:$0xff]  ;;  %v4788_v21 = vld [vmem:[#allocation3_spill] sm:$0xff] }
 0x1f6   :  { %v4789_v4 = vmax.f32 %v4787_v60, %v4788_v21 }
 0x1f7   :  { %v2200_v39 = vmax.f32 %v2151_v61, 0.0  ;;  %v2152_v22 = vadd.f32 %v4263_v46, %v2096_v38 }
 0x1f8   :  { %v1375_v8 = vpop.f32.mrb[136].mxu0  ;;  %v1855_v11 = vpop.f32.mrb[136].mxu1 }
 0x1f9   :  { %2250 = vst.msk [vmem:[%s4660_s3 + $0x80] sm:$0xff] %vm2233_vm4, %v2200_v39  ;;  %v2201_v7 = vmax.f32 %v2152_v22, 0.0  ;;  %v2048_v17 = vmax.f32 %v1375_v8, %v1855_v11  ;;  %v3028_v12 = vpop.f32.mrb[137].mxu0  ;;  %v3138_v9 = vpop.f32.mrb[137].mxu1 }
 0x1fa   :  { %v1378_v44 = vpop.f32.mrb[138].mxu0  ;;  %v1858_v45 = vpop.f32.mrb[138].mxu1  ;;  %v4791_v12 = vld [vmem:[#allocation5_spill] sm:$0xff] }
 0x1fb   :  { %2251 = vst.msk [vmem:[%s4660_s3 + $0x88] sm:$0xff] %vm2233_vm4, %v2201_v7  ;;  %v2097_v42 = vmax.f32 %v4782_v41, %v2048_v17  ;;  %v2049_v51 = vmax.f32 %v1378_v44, %v1858_v45  ;;  %v3029_v58 = vpop.f32.mrb[139].mxu0  ;;  %v3139_v10 = vpop.f32.mrb[139].mxu1  ;;  %v4790_v17 = vld [vmem:[#allocation4_spill] sm:$0xff] }
 0x1fc   :  { %v4792_v9 = vmax.f32 %v4790_v17, %v4791_v12  ;;  %v4793_v58 = vld [vmem:[#allocation6_spill] sm:$0xff]  ;;  %v4794_v10 = vld [vmem:[#allocation7_spill] sm:$0xff] }
 0x1fd   :  { %v2153_v6 = vadd.f32 %v4263_v46, %v2097_v42  ;;  %v2098_v25 = vmax.f32 %v4783_v34, %v2049_v51 }
 0x1ff   :  { %v2202_v26 = vmax.f32 %v2153_v6, 0.0  ;;  %v2154_v19 = vadd.f32 %v4263_v46, %v2098_v25  ;;  %v4795_v6 = vmax.f32 %v4793_v58, %v4794_v10 }
 0x200   :  { %v1383_v23 = vpop.f32.mrb[140].mxu0  ;;  %v1863_v0 = vpop.f32.mrb[140].mxu1 }
 0x201   :  { %2252 = vst.msk [vmem:[%s4660_s3 + $0x90] sm:$0xff] %vm2233_vm4, %v2202_v26  ;;  %v2203_v55 = vmax.f32 %v2154_v19, 0.0  ;;  %v2050_v5 = vmax.f32 %v1383_v23, %v1863_v0  ;;  %v3032_v16 = vpop.f32.mrb[141].mxu0  ;;  %v3142_v30 = vpop.f32.mrb[141].mxu1 }
 0x202   :  { %v1386_v49 = vpop.f32.mrb[142].mxu0  ;;  %v1866_v35 = vpop.f32.mrb[142].mxu1 }
 0x203   :  { %2253 = vst.msk [vmem:[%s4660_s3 + $0x98] sm:$0xff] %vm2233_vm4, %v2203_v55  ;;  %v2099_v54 = vmax.f32 %v4784_v53, %v2050_v5  ;;  %v2051_v36 = vmax.f32 %v1386_v49, %v1866_v35  ;;  %v3033_v50 = vpop.f32.mrb[143].mxu0  ;;  %v3143_v40 = vpop.f32.mrb[143].mxu1  ;;  %v4796_v35 = vld [vmem:[#allocation8_spill] sm:$0xff]  ;;  %v4797_v53 = vld [vmem:[#allocation9_spill] sm:$0xff] }
 0x205   :  { %v2155_v32 = vadd.f32 %v4263_v46, %v2099_v54  ;;  %v2100_v24 = vmax.f32 %v4785_v33, %v2051_v36  ;;  %v4798_v54 = vmax.f32 %v4796_v35, %v4797_v53 }
 0x207   :  { %v2204_v56 = vmax.f32 %v2155_v32, 0.0  ;;  %v2156_v57 = vadd.f32 %v4263_v46, %v2100_v24  ;;  %v4799_v24 = vld [vmem:[#allocation10_spill] sm:$0xff] }
 0x208   :  { %v1391_v13 = vpop.f32.mrb[144].mxu0  ;;  %v1871_v14 = vpop.f32.mrb[144].mxu1 }
 0x209   :  { %2254 = vst.msk [vmem:[%s4660_s3 + $0xa0] sm:$0xff] %vm2233_vm4, %v2204_v56  ;;  %v2205_v28 = vmax.f32 %v2156_v57, 0.0  ;;  %v2052_v29 = vmax.f32 %v1391_v13, %v1871_v14  ;;  %v3036_v3 = vpop.f32.mrb[145].mxu0  ;;  %v3146_v43 = vpop.f32.mrb[145].mxu1  ;;  %v4800_v56 = vld [vmem:[#allocation11_spill] sm:$0xff] }
 0x20a   :  { %v1394_v47 = vpop.f32.mrb[146].mxu0  ;;  %v1874_v1 = vpop.f32.mrb[146].mxu1  ;;  %v4801_v57 = vmax.f32 %v4799_v24, %v4800_v56 }
 0x20b   :  { %2255 = vst.msk [vmem:[%s4660_s3 + $0xa8] sm:$0xff] %vm2233_vm4, %v2205_v28  ;;  %v2101_v31 = vmax.f32 %v4786_v48, %v2052_v29  ;;  %v2053_v2 = vmax.f32 %v1394_v47, %v1874_v1  ;;  %v3037_v63 = vpop.f32.mrb[147].mxu0  ;;  %v3147_v20 = vpop.f32.mrb[147].mxu1 }
 0x20c   :  { %v4802_v63 = vld [vmem:[#allocation12_spill] sm:$0xff]  ;;  %v4803_v20 = vld [vmem:[#allocation13_spill] sm:$0xff] }
 0x20d   :  { %v2157_v59 = vadd.f32 %v4263_v46, %v2101_v31  ;;  %v2102_v37 = vmax.f32 %v4789_v4, %v2053_v2 }
 0x20f   :  { %v2206_v61 = vmax.f32 %v2157_v59, 0.0  ;;  %v2158_v62 = vadd.f32 %v4263_v46, %v2102_v37  ;;  %v4804_v59 = vmax.f32 %v4802_v63, %v4803_v20 }
 0x210   :  { %v1399_v38 = vpop.f32.mrb[148].mxu0  ;;  %v1879_v39 = vpop.f32.mrb[148].mxu1 }
 0x211   :  { %2256 = vst.msk [vmem:[%s4660_s3 + $0xb0] sm:$0xff] %vm2233_vm4, %v2206_v61  ;;  %v2207_v52 = vmax.f32 %v2158_v62, 0.0  ;;  %v2054_v18 = vmax.f32 %v1399_v38, %v1879_v39  ;;  %v3040_v22 = vpop.f32.mrb[149].mxu0  ;;  %v3150_v8 = vpop.f32.mrb[149].mxu1  ;;  %v4805_v62 = vld [vmem:[#allocation14_spill] sm:$0xff]  ;;  %v4806_v38 = vld [vmem:[#allocation15_spill] sm:$0xff] }
 0x212   :  { %v1402_v11 = vpop.f32.mrb[150].mxu0  ;;  %v1882_v7 = vpop.f32.mrb[150].mxu1  ;;  %v4807_v39 = vmax.f32 %v4805_v62, %v4806_v38 }
 0x213   :  { %2257 = vst.msk [vmem:[%s4660_s3 + $0xb8] sm:$0xff] %vm2233_vm4, %v2207_v52  ;;  %v2103_v44 = vmax.f32 %v4792_v9, %v2054_v18  ;;  %v2055_v45 = vmax.f32 %v1402_v11, %v1882_v7  ;;  %v3041_v41 = vpop.f32.mrb[151].mxu0  ;;  %v3151_v42 = vpop.f32.mrb[151].mxu1 }
 0x214   :  { %v4808_v41 = vld [vmem:[#allocation16_spill] sm:$0xff]  ;;  %v4809_v42 = vld [vmem:[#allocation17_spill] sm:$0xff] }
 0x215   :  { %v2159_v51 = vadd.f32 %v4263_v46, %v2103_v44  ;;  %v2104_v34 = vmax.f32 %v4795_v6, %v2055_v45 }
 0x217   :  { %v2208_v25 = vmax.f32 %v2159_v51, 0.0  ;;  %v2160_v26 = vadd.f32 %v4263_v46, %v2104_v34  ;;  %v4810_v51 = vmax.f32 %v4808_v41, %v4809_v42 }
 0x218   :  { %v1407_v19 = vpop.f32.mrb[152].mxu0  ;;  %v1887_v23 = vpop.f32.mrb[152].mxu1 }
 0x219   :  { %2258 = vst.msk [vmem:[%s4660_s3 + $0xc0] sm:$0xff] %vm2233_vm4, %v2208_v25  ;;  %v2209_v0 = vmax.f32 %v2160_v26, 0.0  ;;  %v2056_v55 = vmax.f32 %v1407_v19, %v1887_v23  ;;  %v3044_v5 = vpop.f32.mrb[153].mxu0  ;;  %v3154_v16 = vpop.f32.mrb[153].mxu1  ;;  %v4811_v26 = vld [vmem:[#allocation18_spill] sm:$0xff]  ;;  %v4812_v19 = vld [vmem:[#allocation19_spill] sm:$0xff] }
 0x21a   :  { %v1410_v30 = vpop.f32.mrb[154].mxu0  ;;  %v1890_v49 = vpop.f32.mrb[154].mxu1  ;;  %v4813_v23 = vmax.f32 %v4811_v26, %v4812_v19 }
 0x21b   :  { %2259 = vst.msk [vmem:[%s4660_s3 + $0xc8] sm:$0xff] %vm2233_vm4, %v2209_v0  ;;  %v2105_v36 = vmax.f32 %v4798_v54, %v2056_v55  ;;  %v2057_v50 = vmax.f32 %v1410_v30, %v1890_v49  ;;  %v3045_v40 = vpop.f32.mrb[155].mxu0  ;;  %v3155_v32 = vpop.f32.mrb[155].mxu1 }
 0x21c   :  { %v4814_v40 = vld [vmem:[#allocation20_spill] sm:$0xff]  ;;  %v4815_v32 = vld [vmem:[#allocation21_spill] sm:$0xff] }
 0x21d   :  { %v2161_v33 = vadd.f32 %v4263_v46, %v2105_v36  ;;  %v2106_v13 = vmax.f32 %v4801_v57, %v2057_v50 }
 0x21f   :  { %v2210_v14 = vmax.f32 %v2161_v33, 0.0  ;;  %v2162_v28 = vadd.f32 %v4263_v46, %v2106_v13  ;;  %v4816_v33 = vmax.f32 %v4814_v40, %v4815_v32 }
 0x220   :  { %v1415_v29 = vpop.f32.mrb[156].mxu0  ;;  %v1895_v3 = vpop.f32.mrb[156].mxu1 }
 0x221   :  { %2260 = vst.msk [vmem:[%s4660_s3 + $0xd0] sm:$0xff] %vm2233_vm4, %v2210_v14  ;;  %v2211_v43 = vmax.f32 %v2162_v28, 0.0  ;;  %v2058_v47 = vmax.f32 %v1415_v29, %v1895_v3  ;;  %v3048_v1 = vpop.f32.mrb[157].mxu0  ;;  %v3158_v48 = vpop.f32.mrb[157].mxu1  ;;  %v4817_v28 = vld [vmem:[#allocation22_spill] sm:$0xff]  ;;  %v4818_v29 = vld [vmem:[#allocation23_spill] sm:$0xff] }
 0x222   :  { %v1418_v31 = vpop.f32.mrb[158].mxu0  ;;  %v1898_v2 = vpop.f32.mrb[158].mxu1  ;;  %v4819_v3 = vmax.f32 %v4817_v28, %v4818_v29 }
 0x223   :  { %2261 = vst.msk [vmem:[%s4660_s3 + $0xd8] sm:$0xff] %vm2233_vm4, %v2211_v43  ;;  %v2107_v60 = vmax.f32 %v4804_v59, %v2058_v47  ;;  %v2059_v21 = vmax.f32 %v1418_v31, %v1898_v2  ;;  %v3049_v4 = vpop.f32.mrb[159].mxu0  ;;  %v3159_v37 = vpop.f32.mrb[159].mxu1 }
 0x224   :  { %v4820_v4 = vld [vmem:[#allocation24_spill] sm:$0xff]  ;;  %v4821_v37 = vld [vmem:[#allocation25_spill] sm:$0xff] }
 0x225   :  { %v2163_v61 = vadd.f32 %v4263_v46, %v2107_v60  ;;  %v2108_v52 = vmax.f32 %v4807_v39, %v2059_v21 }
 0x227   :  { %v2212_v18 = vmax.f32 %v2163_v61, 0.0  ;;  %v2164_v22 = vadd.f32 %v4263_v46, %v2108_v52  ;;  %v4822_v61 = vmax.f32 %v4820_v4, %v4821_v37 }
 0x228   :  { %v1423_v8 = vpop.f32.mrb[160].mxu0  ;;  %v1903_v11 = vpop.f32.mrb[160].mxu1 }
 0x229   :  { %2262 = vst.msk [vmem:[%s4660_s3 + $0xe0] sm:$0xff] %vm2233_vm4, %v2212_v18  ;;  %v2213_v7 = vmax.f32 %v2164_v22, 0.0  ;;  %v2060_v17 = vmax.f32 %v1423_v8, %v1903_v11  ;;  %v3052_v12 = vpop.f32.mrb[161].mxu0  ;;  %v3162_v9 = vpop.f32.mrb[161].mxu1  ;;  %v4823_v22 = vld [vmem:[#allocation26_spill] sm:$0xff]  ;;  %v4824_v8 = vld [vmem:[#allocation27_spill] sm:$0xff] }
 0x22a   :  { %v1426_v44 = vpop.f32.mrb[162].mxu0  ;;  %v1906_v45 = vpop.f32.mrb[162].mxu1  ;;  %v4825_v11 = vmax.f32 %v4823_v22, %v4824_v8 }
 0x22b   :  { %2263 = vst.msk [vmem:[%s4660_s3 + $0xe8] sm:$0xff] %vm2233_vm4, %v2213_v7  ;;  %v2109_v58 = vmax.f32 %v4810_v51, %v2060_v17  ;;  %v2061_v10 = vmax.f32 %v1426_v44, %v1906_v45  ;;  %v3053_v6 = vpop.f32.mrb[163].mxu0  ;;  %v3163_v34 = vpop.f32.mrb[163].mxu1 }
 0x22c   :  { %v4826_v6 = vld [vmem:[#allocation28_spill] sm:$0xff]  ;;  %v4827_v34 = vld [vmem:[#allocation29_spill] sm:$0xff] }
 0x22d   :  { %v2165_v25 = vadd.f32 %v4263_v46, %v2109_v58  ;;  %v2110_v0 = vmax.f32 %v4813_v23, %v2061_v10 }
 0x22f   :  { %v2214_v55 = vmax.f32 %v2165_v25, 0.0  ;;  %v2166_v5 = vadd.f32 %v4263_v46, %v2110_v0  ;;  %v4828_v25 = vmax.f32 %v4826_v6, %v4827_v34 }
 0x230   :  { %v1431_v16 = vpop.f32.mrb[164].mxu0  ;;  %v1911_v30 = vpop.f32.mrb[164].mxu1 }
 0x231   :  { %2264 = vst.msk [vmem:[%s4660_s3 + $0xf0] sm:$0xff] %vm2233_vm4, %v2214_v55  ;;  %v2215_v49 = vmax.f32 %v2166_v5, 0.0  ;;  %v2062_v35 = vmax.f32 %v1431_v16, %v1911_v30  ;;  %v3056_v53 = vpop.f32.mrb[165].mxu0  ;;  %v3166_v54 = vpop.f32.mrb[165].mxu1  ;;  %v4829_v5 = vld [vmem:[#allocation30_spill] sm:$0xff]  ;;  %v4830_v16 = vld [vmem:[#allocation31_spill] sm:$0xff] }
 0x232   :  { %v1434_v36 = vpop.f32.mrb[166].mxu0  ;;  %v1914_v50 = vpop.f32.mrb[166].mxu1  ;;  %v4831_v30 = vmax.f32 %v4829_v5, %v4830_v16 }
 0x233   :  { %2265 = vst.msk [vmem:[%s4660_s3 + $0xf8] sm:$0xff] %vm2233_vm4, %v2215_v49  ;;  %v2111_v24 = vmax.f32 %v4816_v33, %v2062_v35  ;;  %v2063_v56 = vmax.f32 %v1434_v36, %v1914_v50  ;;  %v3057_v57 = vpop.f32.mrb[167].mxu0  ;;  %v3167_v13 = vpop.f32.mrb[167].mxu1 }
 0x234   :  { %v4832_v57 = vld [vmem:[#allocation32_spill] sm:$0xff]  ;;  %v4833_v13 = vld [vmem:[#allocation33_spill] sm:$0xff] }
 0x235   :  { %v2167_v14 = vadd.f32 %v4263_v46, %v2111_v24  ;;  %v2112_v43 = vmax.f32 %v4819_v3, %v2063_v56 }
 0x237   :  { %v2216_v47 = vmax.f32 %v2167_v14, 0.0  ;;  %v2168_v1 = vadd.f32 %v4263_v46, %v2112_v43  ;;  %v4834_v14 = vmax.f32 %v4832_v57, %v4833_v13 }
 0x238   :  { %v1439_v48 = vpop.f32.mrb[168].mxu0  ;;  %v1919_v31 = vpop.f32.mrb[168].mxu1 }
 0x239   :  { %2266 = vst.msk [vmem:[%s4660_s3 + $0x100] sm:$0xff] %vm2233_vm4, %v2216_v47  ;;  %v2217_v2 = vmax.f32 %v2168_v1, 0.0  ;;  %v2064_v63 = vmax.f32 %v1439_v48, %v1919_v31  ;;  %v3060_v20 = vpop.f32.mrb[169].mxu0  ;;  %v3170_v59 = vpop.f32.mrb[169].mxu1  ;;  %v4835_v1 = vld [vmem:[#allocation34_spill] sm:$0xff]  ;;  %v4836_v48 = vld [vmem:[#allocation35_spill] sm:$0xff] }
 0x23a   :  { %v1442_v60 = vpop.f32.mrb[170].mxu0  ;;  %v1922_v21 = vpop.f32.mrb[170].mxu1  ;;  %v4837_v31 = vmax.f32 %v4835_v1, %v4836_v48 }
 0x23b   :  { %2267 = vst.msk [vmem:[%s4660_s3 + $0x108] sm:$0xff] %vm2233_vm4, %v2217_v2  ;;  %v2113_v62 = vmax.f32 %v4822_v61, %v2064_v63  ;;  %v2065_v38 = vmax.f32 %v1442_v60, %v1922_v21  ;;  %v3061_v39 = vpop.f32.mrb[171].mxu0  ;;  %v3171_v52 = vpop.f32.mrb[171].mxu1 }
 0x23c   :  { %v4838_v39 = vld [vmem:[#allocation36_spill] sm:$0xff]  ;;  %v4839_v52 = vld [vmem:[#allocation37_spill] sm:$0xff] }
 0x23d   :  { %v2169_v18 = vadd.f32 %v4263_v46, %v2113_v62  ;;  %v2114_v7 = vmax.f32 %v4825_v11, %v2065_v38 }
 0x23f   :  { %v2218_v17 = vmax.f32 %v2169_v18, 0.0  ;;  %v2170_v12 = vadd.f32 %v4263_v46, %v2114_v7  ;;  %v4840_v18 = vmax.f32 %v4838_v39, %v4839_v52 }
 0x240   :  { %v1447_v9 = vpop.f32.mrb[172].mxu0  ;;  %v1927_v44 = vpop.f32.mrb[172].mxu1 }
 0x241   :  { %2268 = vst.msk [vmem:[%s4660_s3 + $0x110] sm:$0xff] %vm2233_vm4, %v2218_v17  ;;  %v2219_v45 = vmax.f32 %v2170_v12, 0.0  ;;  %v2066_v41 = vmax.f32 %v1447_v9, %v1927_v44  ;;  %v3064_v42 = vpop.f32.mrb[173].mxu0  ;;  %v3174_v51 = vpop.f32.mrb[173].mxu1  ;;  %v4841_v12 = vld [vmem:[#allocation38_spill] sm:$0xff]  ;;  %v4842_v9 = vld [vmem:[#allocation39_spill] sm:$0xff] }
 0x242   :  { %v1450_v58 = vpop.f32.mrb[174].mxu0  ;;  %v1930_v10 = vpop.f32.mrb[174].mxu1  ;;  %v4843_v44 = vmax.f32 %v4841_v12, %v4842_v9 }
 0x243   :  { %2269 = vst.msk [vmem:[%s4660_s3 + $0x118] sm:$0xff] %vm2233_vm4, %v2219_v45  ;;  %v2115_v26 = vmax.f32 %v4828_v25, %v2066_v41  ;;  %v2067_v19 = vmax.f32 %v1450_v58, %v1930_v10  ;;  %v3065_v23 = vpop.f32.mrb[175].mxu0  ;;  %v3175_v0 = vpop.f32.mrb[175].mxu1 }
 0x244   :  { %v4844_v23 = vld [vmem:[#allocation40_spill] sm:$0xff]  ;;  %v4845_v0 = vld [vmem:[#allocation41_spill] sm:$0xff] }
 0x245   :  { %v2171_v55 = vadd.f32 %v4263_v46, %v2115_v26  ;;  %v2116_v49 = vmax.f32 %v4831_v30, %v2067_v19 }
 0x247   :  { %v2220_v35 = vmax.f32 %v2171_v55, 0.0  ;;  %v2172_v53 = vadd.f32 %v4263_v46, %v2116_v49  ;;  %v4846_v55 = vmax.f32 %v4844_v23, %v4845_v0 }
 0x248   :  { %v1455_v54 = vpop.f32.mrb[176].mxu0  ;;  %v1935_v36 = vpop.f32.mrb[176].mxu1 }
 0x249   :  { %2270 = vst.msk [vmem:[%s4660_s3 + $0x120] sm:$0xff] %vm2233_vm4, %v2220_v35  ;;  %v2221_v50 = vmax.f32 %v2172_v53, 0.0  ;;  %v2068_v40 = vmax.f32 %v1455_v54, %v1935_v36  ;;  %v3068_v32 = vpop.f32.mrb[177].mxu0  ;;  %v3178_v33 = vpop.f32.mrb[177].mxu1  ;;  %v4847_v53 = vld [vmem:[#allocation42_spill] sm:$0xff]  ;;  %v4848_v54 = vld [vmem:[#allocation43_spill] sm:$0xff] }
 0x24a   :  { %v1458_v24 = vpop.f32.mrb[178].mxu0  ;;  %v1938_v56 = vpop.f32.mrb[178].mxu1  ;;  %v4849_v36 = vmax.f32 %v4847_v53, %v4848_v54 }
 0x24b   :  { %2271 = vst.msk [vmem:[%s4660_s3 + $0x128] sm:$0xff] %vm2233_vm4, %v2221_v50  ;;  %v2117_v28 = vmax.f32 %v4834_v14, %v2068_v40  ;;  %v2069_v29 = vmax.f32 %v1458_v24, %v1938_v56  ;;  %v3069_v3 = vpop.f32.mrb[179].mxu0  ;;  %v3179_v43 = vpop.f32.mrb[179].mxu1 }
 0x24c   :  { %v4850_v3 = vld [vmem:[#allocation44_spill] sm:$0xff]  ;;  %v4851_v43 = vld [vmem:[#allocation45_spill] sm:$0xff] }
 0x24d   :  { %v2173_v47 = vadd.f32 %v4263_v46, %v2117_v28  ;;  %v2118_v2 = vmax.f32 %v4837_v31, %v2069_v29 }
 0x24f   :  { %v2222_v63 = vmax.f32 %v2173_v47, 0.0  ;;  %v2174_v20 = vadd.f32 %v4263_v46, %v2118_v2  ;;  %v4852_v47 = vmax.f32 %v4850_v3, %v4851_v43 }
 0x250   :  { %v1463_v59 = vpop.f32.mrb[180].mxu0  ;;  %v1943_v60 = vpop.f32.mrb[180].mxu1 }
 0x251   :  { %2272 = vst.msk [vmem:[%s4660_s3 + $0x130] sm:$0xff] %vm2233_vm4, %v2222_v63  ;;  %v2223_v21 = vmax.f32 %v2174_v20, 0.0  ;;  %v2070_v4 = vmax.f32 %v1463_v59, %v1943_v60  ;;  %v3072_v37 = vpop.f32.mrb[181].mxu0  ;;  %v3182_v61 = vpop.f32.mrb[181].mxu1  ;;  %v4853_v20 = vld [vmem:[#allocation46_spill] sm:$0xff]  ;;  %v4854_v59 = vld [vmem:[#allocation47_spill] sm:$0xff] }
 0x252   :  { %v1466_v62 = vpop.f32.mrb[182].mxu0  ;;  %v1946_v38 = vpop.f32.mrb[182].mxu1  ;;  %v4855_v60 = vmax.f32 %v4853_v20, %v4854_v59 }
 0x253   :  { %2273 = vst.msk [vmem:[%s4660_s3 + $0x138] sm:$0xff] %vm2233_vm4, %v2223_v21  ;;  %v2119_v22 = vmax.f32 %v4840_v18, %v2070_v4  ;;  %v2071_v8 = vmax.f32 %v1466_v62, %v1946_v38  ;;  %v3073_v11 = vpop.f32.mrb[183].mxu0  ;;  %v3183_v7 = vpop.f32.mrb[183].mxu1 }
 0x254   :  { %v4856_v11 = vld [vmem:[#allocation48_spill] sm:$0xff]  ;;  %v4857_v7 = vld [vmem:[#allocation49_spill] sm:$0xff] }
 0x255   :  { %v2175_v17 = vadd.f32 %v4263_v46, %v2119_v22  ;;  %v2120_v45 = vmax.f32 %v4843_v44, %v2071_v8 }
 0x257   :  { %v2224_v41 = vmax.f32 %v2175_v17, 0.0  ;;  %v2176_v42 = vadd.f32 %v4263_v46, %v2120_v45  ;;  %v4858_v17 = vmax.f32 %v4856_v11, %v4857_v7 }
 0x258   :  { %v1471_v51 = vpop.f32.mrb[184].mxu0  ;;  %v1951_v58 = vpop.f32.mrb[184].mxu1 }
 0x259   :  { %2274 = vst.msk [vmem:[%s4660_s3 + $0x140] sm:$0xff] %vm2233_vm4, %v2224_v41  ;;  %v2225_v10 = vmax.f32 %v2176_v42, 0.0  ;;  %v2072_v6 = vmax.f32 %v1471_v51, %v1951_v58  ;;  %v3076_v34 = vpop.f32.mrb[185].mxu0  ;;  %v3186_v25 = vpop.f32.mrb[185].mxu1  ;;  %v4859_v42 = vld [vmem:[#allocation50_spill] sm:$0xff] }
 0x25a   :  { %v1474_v26 = vpop.f32.mrb[186].mxu0  ;;  %v1954_v19 = vpop.f32.mrb[186].mxu1  ;;  %v4860_v51 = vmax.f32 %v4248_v27, %v4859_v42  ;;  %v4861_v27 = vld [vmem:[#allocation51_spill] sm:$0xff] }
 0x25b   :  { %2275 = vst.msk [vmem:[%s4660_s3 + $0x148] sm:$0xff] %vm2233_vm4, %v2225_v10  ;;  %v2121_v5 = vmax.f32 %v4846_v55, %v2072_v6  ;;  %v2073_v16 = vmax.f32 %v1474_v26, %v1954_v19  ;;  %v3077_v30 = vpop.f32.mrb[187].mxu0  ;;  %v3187_v49 = vpop.f32.mrb[187].mxu1 }
 0x25d   :  { %v2177_v35 = vadd.f32 %v4263_v46, %v2121_v5  ;;  %v2122_v50 = vmax.f32 %v4849_v36, %v2073_v16  ;;  %v4862_v16 = vmax.f32 %v4254_v15, %v4861_v27 }
 0x25f   :  { %v2226_v40 = vmax.f32 %v2177_v35, 0.0  ;;  %v2178_v32 = vadd.f32 %v4263_v46, %v2122_v50 }
 0x260   :  { %v1479_v33 = vpop.f32.mrb[188].mxu0  ;;  %v1959_v24 = vpop.f32.mrb[188].mxu1 }
 0x261   :  { %2276 = vst.msk [vmem:[%s4660_s3 + $0x150] sm:$0xff] %vm2233_vm4, %v2226_v40  ;;  %v2227_v56 = vmax.f32 %v2178_v32, 0.0  ;;  %v2074_v57 = vmax.f32 %v1479_v33, %v1959_v24  ;;  %v3080_v13 = vpop.f32.mrb[189].mxu0  ;;  %v3190_v14 = vpop.f32.mrb[189].mxu1 }
 0x262   :  { %v1482_v28 = vpop.f32.mrb[190].mxu0  ;;  %v1962_v29 = vpop.f32.mrb[190].mxu1 }
 0x263   :  { %2277 = vst.msk [vmem:[%s4660_s3 + $0x158] sm:$0xff] %vm2233_vm4, %v2227_v56  ;;  %v2123_v1 = vmax.f32 %v4852_v47, %v2074_v57  ;;  %v2075_v48 = vmax.f32 %v1482_v28, %v1962_v29  ;;  %v3081_v31 = vpop.f32.mrb[191].mxu0  ;;  %v3191_v2 = vpop.f32.mrb[191].mxu1 }
 0x265   :  { %v2179_v63 = vadd.f32 %v4263_v46, %v2123_v1  ;;  %v2124_v21 = vmax.f32 %v4855_v60, %v2075_v48 }
 0x267   :  { %v2228_v4 = vmax.f32 %v2179_v63, 0.0  ;;  %v2180_v37 = vadd.f32 %v4263_v46, %v2124_v21 }
 0x268   :  { %v1487_v61 = vpop.f32.mrb[192].mxu0  ;;  %v1967_v62 = vpop.f32.mrb[192].mxu1 }
 0x269   :  { %2278 = vst.msk [vmem:[%s4660_s3 + $0x160] sm:$0xff] %vm2233_vm4, %v2228_v4  ;;  %v2229_v38 = vmax.f32 %v2180_v37, 0.0  ;;  %v2076_v39 = vmax.f32 %v1487_v61, %v1967_v62  ;;  %v3084_v52 = vpop.f32.mrb[193].mxu0  ;;  %v3194_v18 = vpop.f32.mrb[193].mxu1 }
 0x26a   :  { %v1490_v22 = vpop.f32.mrb[194].mxu0  ;;  %v1970_v8 = vpop.f32.mrb[194].mxu1 }
 0x26b   :  { %2279 = vst.msk [vmem:[%s4660_s3 + $0x168] sm:$0xff] %vm2233_vm4, %v2229_v38  ;;  %v2125_v12 = vmax.f32 %v4858_v17, %v2076_v39  ;;  %v2077_v9 = vmax.f32 %v1490_v22, %v1970_v8  ;;  %v3085_v44 = vpop.f32.mrb[195].mxu0  ;;  %v3195_v45 = vpop.f32.mrb[195].mxu1 }
 0x26d   :  { %v2181_v41 = vadd.f32 %v4263_v46, %v2125_v12  ;;  %v2126_v58 = vmax.f32 %v4860_v51, %v2077_v9 }
 0x26f   :  { %v2230_v10 = vmax.f32 %v2181_v41, 0.0  ;;  %v2182_v6 = vadd.f32 %v4263_v46, %v2126_v58 }
 0x270   :  { %v1495_v34 = vpop.f32.mrb[196].mxu0  ;;  %v1975_v25 = vpop.f32.mrb[196].mxu1 }
 0x271   :  { %2280 = vst.msk [vmem:[%s4660_s3 + $0x170] sm:$0xff] %vm2233_vm4, %v2230_v10  ;;  %v2231_v26 = vmax.f32 %v2182_v6, 0.0  ;;  %v2078_v19 = vmax.f32 %v1495_v34, %v1975_v25  ;;  %v3088_v23 = vpop.f32.mrb[197].mxu0  ;;  %v3198_v0 = vpop.f32.mrb[197].mxu1 }
 0x272   :  { %v1498_v55 = vpop.f32.mrb[198].mxu0  ;;  %v1978_v5 = vpop.f32.mrb[198].mxu1 }
 0x273   :  { %2281 = vst.msk [vmem:[%s4660_s3 + $0x178] sm:$0xff] %vm2233_vm4, %v2231_v26  ;;  %v2127_v30 = vmax.f32 %v4862_v16, %v2078_v19  ;;  %v3089_v49 = vpop.f32.mrb[199].mxu0  ;;  %v3199_v35 = vpop.f32.mrb[199].mxu1 }
 0x275   :  { %v2183_v53 = vadd.f32 %v4263_v46, %v2127_v30 }
 0x277   :  { %v2232_v54 = vmax.f32 %v2183_v53, 0.0 }
 0x279   :  { %2282 = vst.msk [vmem:[%s4660_s3 + $0x180] sm:$0xff] %vm2233_vm4, %v2232_v54 }

// kernel: simple_cnn_forward.4
= control target key start
LH: loop header
LB: loop body
LE: loop exit
PB: predicated region body
PF: predicated region fallthrough
CT: control target
= control target key end

     0   :  { %v752_v0 = vmov 0   ;;  %vm131_vm0 = vcmask 179200   ;;  %vm144_vm1 = vcmask 1042432   ;;  %vm605_vm2 = vcmask 130048   ;;  %s1061_s1 = inlined_call_operand.vmem [shape: bf16[150,16], index: 1, kind: input, shape index: {}]   ;;  %s1062_s0 = inlined_call_operand.vmem [shape: bf16[4,56,150], index: 0, kind: input, shape index: {}]   ;;  %s1063_s2 = inlined_call_operand.vmem [shape: f32[1,16], index: 2, kind: input, shape index: {}]   ;;  %s1064_s3 = inlined_call_operand.vmem [shape: f32[56,16], index: 3, kind: output, shape index: {}]  }
   0x1   :  { %148 = vmatprep.subr.bf16.mxu0 %v752_v0  ;;  %265 = vmatprep.subr.bf16.mxu1 %v752_v0  ;;  %v778_v1 = vld [vmem:[%s1061_s1] sm:$0xff]   ;;  %v785_v2 = vld [vmem:[%s1061_s1 + $0x8] sm:$0xff]   ;;  %v794_v3 = vld [vmem:[%s1061_s1 + $0x10] sm:$0xff]  }
   0x2   :  { %149 = vmatpush1.bf16.msra.mxu0 %v778_v1  ;;  %266 = vmatpush1.bf16.msra.mxu1 %v778_v1  ;;  %v803_v4 = vld [vmem:[%s1061_s1 + $0x18] sm:$0xff]   ;;  %v710_v5 = vld [vmem:[%s1062_s0 + $0x4] ss:$8 sps:$4 sm:$0xff]   ;;  %v838_v9 = vld [vmem:[%s1061_s1 + $0x30] sm:$0xff]  }
   0x3   :  { %150 = vmatprep.subr.bf16.mxu0 %v752_v0  ;;  %267 = vmatprep.subr.bf16.mxu1 %v752_v0  ;;  %v713_v6 = vld [vmem:[%s1062_s0 + $0x3c] ss:$8 sps:$4 sm:$0xff]   ;;  %v829_v8 = vld [vmem:[%s1061_s1 + $0x28] sm:$0xff]   ;;  %v711_v15 = vld [vmem:[%s1062_s0 + $0x38] ss:$8 sps:$4 sm:$0xff]  }
   0x4   :  { %635 = vmatprep.mubr.msk.bf16.mxu0 %vm131_vm0, %v710_v5  ;;  %v819_v7 = vld [vmem:[%s1061_s1 + $0x20] sm:$0xff]   ;;  %654 = vmatprep.mubr.msk.bf16.mxu1 %vm131_vm0, %v713_v6  ;;  %v847_v10 = vld [vmem:[%s1061_s1 + $0x38] sm:$0xff]   ;;  %v707_v12 = vld [vmem:[%s1061_s1 + $0x48] ss:$0 sps:$4 sm:$0x77]  }
   0x5   :  { %v856_v11 = vld [vmem:[%s1061_s1 + $0x40] sm:$0xff]   ;;  %v867_v13 = vsel %vm144_vm1, %v707_v12, 0  ;;  %v714_v16 = vld [vmem:[%s1062_s0 + $0x14] ss:$8 sps:$4 sm:$0xff]   ;;  %v718_v18 = vld [vmem:[%s1062_s0 + $0x10] ss:$8 sps:$4 sm:$0xff]  }
   0x6   :  { %151 = vmatpush1.bf16.msra.mxu0 %v785_v2  ;;  %268 = vmatpush1.bf16.msra.mxu1 %v785_v2  ;;  %v708_v14 = vld [vmem:[%s1062_s0] ss:$8 sps:$4 sm:$0xff]   ;;  %v716_v17 = vld [vmem:[%s1062_s0 + $0x4c] ss:$8 sps:$4 sm:$0xff]   ;;  %v722_v21 = vld [vmem:[%s1062_s0 + $0x5c] ss:$8 sps:$4 sm:$0xff]  }
   0x7   :  { %152 = vmatprep.subr.bf16.mxu0 %v752_v0  ;;  %269 = vmatprep.subr.bf16.mxu1 %v752_v0  ;;  %v719_v19 = vld [vmem:[%s1062_s0 + $0x48] ss:$8 sps:$4 sm:$0xff]   ;;  %v720_v20 = vld [vmem:[%s1062_s0 + $0x24] ss:$8 sps:$4 sm:$0xff]   ;;  %v725_v23 = vld [vmem:[%s1062_s0 + $0x58] ss:$8 sps:$4 sm:$0xff]  }
   0x8   :  { %v724_v22 = vld [vmem:[%s1062_s0 + $0x20] ss:$8 sps:$4 sm:$0xff]   ;;  %v40_v24 = vld [vmem:[%s1062_s0 + $0x30] sm:$0xff]  ;;  %v736_v34 = vld [vmem:[%s1062_s0 + $0x84] ss:$8 sps:$4 sm:$0xff]  }
   0x9   :  { %v645_v25 = vld [vmem:[%s1062_s0 + $0x68] sm:$0xff]  ;;  %v624_v26 = vcombine.high %v40_v24, %v40_v24  ;;  %v623_v28 = vcombine.low %v40_v24, %v40_v24  ;;  %v732_v30 = vld [vmem:[%s1062_s0 + $0x74] ss:$8 sps:$4 sm:$0xff]   ;;  %v730_v32 = vld [vmem:[%s1062_s0 + $0x70] ss:$8 sps:$4 sm:$0xff]  }
   0xa   :  { %153 = vmatpush1.bf16.msra.mxu0 %v794_v3  ;;  %270 = vmatpush1.bf16.msra.mxu1 %v794_v3  ;;  %v653_v27 = vcombine.high %v645_v25, %v645_v25  ;;  %v652_v29 = vcombine.low %v645_v25, %v645_v25  ;;  %v735_v31 = vld [vmem:[%s1062_s0 + $0xac] ss:$8 sps:$4 sm:$0xff]   ;;  %v733_v33 = vld [vmem:[%s1062_s0 + $0xa8] ss:$8 sps:$4 sm:$0xff]   ;;  %v738_v35 = vld [vmem:[%s1062_s0 + $0xbc] ss:$8 sps:$4 sm:$0xff]  }
   0xb   :  { %154 = vmatprep.subr.bf16.mxu0 %v752_v0  ;;  %271 = vmatprep.subr.bf16.mxu1 %v752_v0  ;;  %v740_v36 = vld [vmem:[%s1062_s0 + $0x80] ss:$8 sps:$4 sm:$0xff]   ;;  %v742_v38 = vld [vmem:[%s1062_s0 + $0x94] ss:$8 sps:$4 sm:$0xff]   ;;  %v746_v42 = vld [vmem:[%s1062_s0 + $0x90] ss:$8 sps:$4 sm:$0xff]  }
   0xc   :  { %v741_v37 = vld [vmem:[%s1062_s0 + $0xb8] ss:$8 sps:$4 sm:$0xff]   ;;  %v744_v39 = vld [vmem:[%s1062_s0 + $0xcc] ss:$8 sps:$4 sm:$0xff]   ;;  %v747_v43 = vld [vmem:[%s1062_s0 + $0xc8] ss:$8 sps:$4 sm:$0xff]  }
   0xd   :  { %v664_v40 = vld [vmem:[%s1062_s0 + $0xa0] sm:$0xff]  ;;  %v683_v41 = vld [vmem:[%s1062_s0 + $0xd8] sm:$0xff] }
   0xe   :  { %155 = vmatpush1.bf16.msra.mxu0 %v803_v4  ;;  %272 = vmatpush1.bf16.msra.mxu1 %v803_v4  ;;  %v672_v44 = vcombine.high %v664_v40, %v664_v40  ;;  %v691_v45 = vcombine.high %v683_v41, %v683_v41  ;;  %v671_v46 = vcombine.low %v664_v40, %v664_v40 }
   0xf   :  { %156 = vmatprep.subr.bf16.mxu0 %v752_v0  ;;  %273 = vmatprep.subr.bf16.mxu1 %v752_v0  ;;  %v690_v47 = vcombine.low %v683_v41, %v683_v41 }
  0x12   :  { %157 = vmatpush1.bf16.msra.mxu0 %v819_v7  ;;  %274 = vmatpush1.bf16.msra.mxu1 %v819_v7 }
  0x13   :  { %158 = vmatprep.subr.bf16.mxu0 %v752_v0  ;;  %275 = vmatprep.subr.bf16.mxu1 %v752_v0 }
  0x16   :  { %159 = vmatpush1.bf16.msra.mxu0 %v829_v8  ;;  %276 = vmatpush1.bf16.msra.mxu1 %v829_v8 }
  0x17   :  { %160 = vmatprep.subr.bf16.mxu0 %v752_v0  ;;  %277 = vmatprep.subr.bf16.mxu1 %v752_v0 }
  0x1a   :  { %161 = vmatpush1.bf16.msra.mxu0 %v838_v9  ;;  %278 = vmatpush1.bf16.msra.mxu1 %v838_v9 }
  0x1b   :  { %162 = vmatprep.subr.bf16.mxu0 %v752_v0  ;;  %279 = vmatprep.subr.bf16.mxu1 %v752_v0 }
  0x1e   :  { %163 = vmatpush1.bf16.msra.mxu0 %v847_v10  ;;  %280 = vmatpush1.bf16.msra.mxu1 %v847_v10 }
  0x1f   :  { %164 = vmatprep.subr.bf16.mxu0 %v752_v0  ;;  %281 = vmatprep.subr.bf16.mxu1 %v752_v0 }
  0x22   :  { %165 = vmatpush1.bf16.msra.mxu0 %v856_v11  ;;  %282 = vmatpush1.bf16.msra.mxu1 %v856_v11 }
  0x23   :  { %166 = vmatprep.subr.bf16.mxu0 %v752_v0  ;;  %283 = vmatprep.subr.bf16.mxu1 %v752_v0 }
  0x26   :  { %167 = vmatpush1.bf16.msra.mxu0 %v867_v13  ;;  %284 = vmatpush1.bf16.msra.mxu1 %v867_v13 }
  0x27   :  { %382 = vmatprep.subr.bf16.mxu0 %v752_v0  ;;  %499 = vmatprep.subr.bf16.mxu1 %v752_v0 }
  0x29   :  { %181 = vmatmul.mubr.bf16.vlgmr.msra.gmra.mrb[0].mxu0 %v708_v14  ;;  %298 = vmatmul.mubr.bf16.vlgmr.msra.gmra.mrb[0].mxu1 %v711_v15 }
  0x2a   :  { %383 = vmatpush1.bf16.msra.mxu0 %v778_v1  ;;  %500 = vmatpush1.bf16.msra.mxu1 %v778_v1 }
  0x2b   :  { %384 = vmatprep.subr.bf16.mxu0 %v752_v0  ;;  %501 = vmatprep.subr.bf16.mxu1 %v752_v0 }
  0x2c   :  { %636 = vmatprep.mubr.msk.bf16.mxu0 %vm131_vm0, %v714_v16  ;;  %655 = vmatprep.mubr.msk.bf16.mxu1 %vm131_vm0, %v716_v17 }
  0x2e   :  { %385 = vmatpush1.bf16.msra.mxu0 %v785_v2  ;;  %502 = vmatpush1.bf16.msra.mxu1 %v785_v2 }
  0x2f   :  { %386 = vmatprep.subr.bf16.mxu0 %v752_v0  ;;  %503 = vmatprep.subr.bf16.mxu1 %v752_v0 }
  0x31   :  { %189 = vmatmul.mubr.bf16.gmra.mrb[4].mxu0 %v718_v18  ;;  %306 = vmatmul.mubr.bf16.gmra.mrb[4].mxu1 %v719_v19 }
  0x32   :  { %387 = vmatpush1.bf16.msra.mxu0 %v794_v3  ;;  %504 = vmatpush1.bf16.msra.mxu1 %v794_v3 }
  0x33   :  { %388 = vmatprep.subr.bf16.mxu0 %v752_v0  ;;  %505 = vmatprep.subr.bf16.mxu1 %v752_v0 }
  0x34   :  { %637 = vmatprep.mubr.msk.bf16.mxu0 %vm131_vm0, %v720_v20  ;;  %656 = vmatprep.mubr.msk.bf16.mxu1 %vm131_vm0, %v722_v21 }
  0x36   :  { %389 = vmatpush1.bf16.msra.mxu0 %v803_v4  ;;  %506 = vmatpush1.bf16.msra.mxu1 %v803_v4 }
  0x37   :  { %390 = vmatprep.subr.bf16.mxu0 %v752_v0  ;;  %507 = vmatprep.subr.bf16.mxu1 %v752_v0 }
  0x39   :  { %197 = vmatmul.mubr.bf16.gmra.mrb[8].mxu0 %v724_v22  ;;  %314 = vmatmul.mubr.bf16.gmra.mrb[8].mxu1 %v725_v23 }
  0x3a   :  { %391 = vmatpush1.bf16.msra.mxu0 %v819_v7  ;;  %508 = vmatpush1.bf16.msra.mxu1 %v819_v7 }
  0x3b   :  { %392 = vmatprep.subr.bf16.mxu0 %v752_v0  ;;  %509 = vmatprep.subr.bf16.mxu1 %v752_v0 }
  0x3c   :  { %638 = vmatprep.mubr.msk.bf16.mxu0 %vm131_vm0, %v624_v26  ;;  %657 = vmatprep.mubr.msk.bf16.mxu1 %vm131_vm0, %v653_v27 }
  0x3e   :  { %393 = vmatpush1.bf16.msra.mxu0 %v829_v8  ;;  %510 = vmatpush1.bf16.msra.mxu1 %v829_v8 }
  0x3f   :  { %394 = vmatprep.subr.bf16.mxu0 %v752_v0  ;;  %511 = vmatprep.subr.bf16.mxu1 %v752_v0 }
  0x41   :  { %205 = vmatmul.mubr.bf16.gmra.mrb[12].mxu0 %v623_v28  ;;  %322 = vmatmul.mubr.bf16.gmra.mrb[12].mxu1 %v652_v29  ;;  %v696_v28 = vld [vmem:[%s1063_s2] ss:$0 sm:$0xff] }
  0x42   :  { %395 = vmatpush1.bf16.msra.mxu0 %v838_v9  ;;  %512 = vmatpush1.bf16.msra.mxu1 %v838_v9 }
  0x43   :  { %396 = vmatprep.subr.bf16.mxu0 %v752_v0  ;;  %513 = vmatprep.subr.bf16.mxu1 %v752_v0 }
  0x44   :  { %673 = vmatprep.mubr.msk.bf16.mxu0 %vm131_vm0, %v732_v30  ;;  %692 = vmatprep.mubr.msk.bf16.mxu1 %vm131_vm0, %v735_v31 }
  0x46   :  { %397 = vmatpush1.bf16.msra.mxu0 %v847_v10  ;;  %514 = vmatpush1.bf16.msra.mxu1 %v847_v10 }
  0x47   :  { %398 = vmatprep.subr.bf16.mxu0 %v752_v0  ;;  %515 = vmatprep.subr.bf16.mxu1 %v752_v0 }
  0x4a   :  { %399 = vmatpush1.bf16.msra.mxu0 %v856_v11  ;;  %516 = vmatpush1.bf16.msra.mxu1 %v856_v11 }
  0x4b   :  { %400 = vmatprep.subr.bf16.mxu0 %v752_v0  ;;  %517 = vmatprep.subr.bf16.mxu1 %v752_v0 }
  0x4e   :  { %401 = vmatpush1.bf16.msra.mxu0 %v867_v13  ;;  %518 = vmatpush1.bf16.msra.mxu1 %v867_v13 }
  0x51   :  { %415 = vmatmul.mubr.bf16.vlgmr.msra.gmra.mrb[16].mxu0 %v730_v32  ;;  %532 = vmatmul.mubr.bf16.vlgmr.msra.gmra.mrb[16].mxu1 %v733_v33 }
  0x52   :  { %674 = vmatprep.mubr.msk.bf16.mxu0 %vm131_vm0, %v736_v34  ;;  %693 = vmatprep.mubr.msk.bf16.mxu1 %vm131_vm0, %v738_v35 }
  0x59   :  { %423 = vmatmul.mubr.bf16.gmra.mrb[20].mxu0 %v740_v36  ;;  %540 = vmatmul.mubr.bf16.gmra.mrb[20].mxu1 %v741_v37 }
  0x5a   :  { %675 = vmatprep.mubr.msk.bf16.mxu0 %vm131_vm0, %v742_v38  ;;  %694 = vmatprep.mubr.msk.bf16.mxu1 %vm131_vm0, %v744_v39 }
  0x61   :  { %431 = vmatmul.mubr.bf16.gmra.mrb[24].mxu0 %v746_v42  ;;  %548 = vmatmul.mubr.bf16.gmra.mrb[24].mxu1 %v747_v43 }
  0x62   :  { %676 = vmatprep.mubr.msk.bf16.mxu0 %vm131_vm0, %v672_v44  ;;  %695 = vmatprep.mubr.msk.bf16.mxu1 %vm131_vm0, %v691_v45 }
  0x69   :  { %439 = vmatmul.mubr.bf16.gmra.mrb[28].mxu0 %v671_v46  ;;  %556 = vmatmul.mubr.bf16.gmra.mrb[28].mxu1 %v690_v47 }
  0xfc   :  { %v182_v48 = vpop.f32.mrb[0].mxu0  ;;  %v299_v49 = vpop.f32.mrb[0].mxu1 }
  0xfd   :  { %v563_v50 = vmax.f32 %v182_v48, %v299_v49  ;;  %v184_v51 = vpop.f32.mrb[1].mxu0  ;;  %v301_v52 = vpop.f32.mrb[1].mxu1 }
  0xfe   :  { %v185_v53 = vpop.f32.mrb[2].mxu0  ;;  %v302_v54 = vpop.f32.mrb[2].mxu1 }
  0xff   :  { %v564_v55 = vmax.f32 %v185_v53, %v302_v54  ;;  %v187_v56 = vpop.f32.mrb[3].mxu0  ;;  %v304_v57 = vpop.f32.mrb[3].mxu1 }
 0x104   :  { %v190_v58 = vpop.f32.mrb[4].mxu0  ;;  %v307_v59 = vpop.f32.mrb[4].mxu1 }
 0x105   :  { %v565_v60 = vmax.f32 %v190_v58, %v307_v59  ;;  %v192_v61 = vpop.f32.mrb[5].mxu0  ;;  %v309_v62 = vpop.f32.mrb[5].mxu1 }
 0x106   :  { %v193_v63 = vpop.f32.mrb[6].mxu0  ;;  %v310_v0 = vpop.f32.mrb[6].mxu1 }
 0x107   :  { %v566_v1 = vmax.f32 %v193_v63, %v310_v0  ;;  %v195_v2 = vpop.f32.mrb[7].mxu0  ;;  %v312_v3 = vpop.f32.mrb[7].mxu1 }
 0x10c   :  { %v1003_v4 = vpop.f32.mrb[8].mxu0  ;;  %v1005_v5 = vpop.f32.mrb[8].mxu1 }
 0x10d   :  { %v567_v6 = vmax.f32 %v1003_v4, %v1005_v5  ;;  %v200_v7 = vpop.f32.mrb[9].mxu0  ;;  %v317_v8 = vpop.f32.mrb[9].mxu1 }
 0x10e   :  { %v1009_v9 = vpop.f32.mrb[10].mxu0  ;;  %v1011_v10 = vpop.f32.mrb[10].mxu1 }
 0x10f   :  { %v568_v11 = vmax.f32 %v1009_v9, %v1011_v10  ;;  %v203_v12 = vpop.f32.mrb[11].mxu0  ;;  %v320_v13 = vpop.f32.mrb[11].mxu1 }
 0x114   :  { %v1015_v14 = vpop.f32.mrb[12].mxu0  ;;  %v1017_v15 = vpop.f32.mrb[12].mxu1 }
 0x115   :  { %v569_v16 = vmax.f32 %v1015_v14, %v1017_v15  ;;  %v208_v17 = vpop.f32.mrb[13].mxu0  ;;  %v325_v18 = vpop.f32.mrb[13].mxu1 }
 0x116   :  { %v209_v19 = vpop.f32.mrb[14].mxu0  ;;  %v326_v20 = vpop.f32.mrb[14].mxu1 }
 0x117   :  { %v210_v21 = vpop.f32.mrb[15].mxu0  ;;  %v327_v22 = vpop.f32.mrb[15].mxu1 }
 0x124   :  { %v416_v23 = vpop.f32.mrb[16].mxu0  ;;  %v533_v24 = vpop.f32.mrb[16].mxu1 }
 0x125   :  { %v570_v25 = vmax.f32 %v416_v23, %v533_v24  ;;  %v418_v26 = vpop.f32.mrb[17].mxu0  ;;  %v535_v27 = vpop.f32.mrb[17].mxu1 }
 0x126   :  { %v419_v29 = vpop.f32.mrb[18].mxu0  ;;  %v536_v30 = vpop.f32.mrb[18].mxu1 }
 0x127   :  { %v577_v31 = vmax.f32 %v563_v50, %v570_v25  ;;  %v571_v32 = vmax.f32 %v419_v29, %v536_v30  ;;  %v421_v33 = vpop.f32.mrb[19].mxu0  ;;  %v538_v34 = vpop.f32.mrb[19].mxu1 }
 0x129   :  { %v591_v35 = vadd.f32 %v696_v28, %v577_v31  ;;  %v578_v36 = vmax.f32 %v564_v55, %v571_v32 }
 0x12b   :  { %v598_v37 = vmax.f32 %v591_v35, 0.0  ;;  %v592_v38 = vadd.f32 %v696_v28, %v578_v36 }
 0x12c   :  { %v424_v39 = vpop.f32.mrb[20].mxu0  ;;  %v541_v40 = vpop.f32.mrb[20].mxu1 }
 0x12d   :  { %606 = vst.msk [vmem:[%s1064_s3] sm:$0xff] %vm605_vm2, %v598_v37  ;;  %v599_v41 = vmax.f32 %v592_v38, 0.0  ;;  %v572_v42 = vmax.f32 %v424_v39, %v541_v40  ;;  %v426_v43 = vpop.f32.mrb[21].mxu0  ;;  %v543_v44 = vpop.f32.mrb[21].mxu1 }
 0x12e   :  { %v427_v45 = vpop.f32.mrb[22].mxu0  ;;  %v544_v46 = vpop.f32.mrb[22].mxu1 }
 0x12f   :  { %607 = vst.msk [vmem:[%s1064_s3 + $0x8] sm:$0xff] %vm605_vm2, %v599_v41  ;;  %v579_v47 = vmax.f32 %v565_v60, %v572_v42  ;;  %v573_v48 = vmax.f32 %v427_v45, %v544_v46  ;;  %v429_v49 = vpop.f32.mrb[23].mxu0  ;;  %v546_v50 = vpop.f32.mrb[23].mxu1 }
 0x131   :  { %v593_v51 = vadd.f32 %v696_v28, %v579_v47  ;;  %v580_v52 = vmax.f32 %v566_v1, %v573_v48 }
 0x133   :  { %v600_v53 = vmax.f32 %v593_v51, 0.0  ;;  %v594_v54 = vadd.f32 %v696_v28, %v580_v52 }
 0x134   :  { %v432_v55 = vpop.f32.mrb[24].mxu0  ;;  %v549_v56 = vpop.f32.mrb[24].mxu1 }
 0x135   :  { %608 = vst.msk [vmem:[%s1064_s3 + $0x10] sm:$0xff] %vm605_vm2, %v600_v53  ;;  %v601_v57 = vmax.f32 %v594_v54, 0.0  ;;  %v574_v58 = vmax.f32 %v432_v55, %v549_v56  ;;  %v434_v59 = vpop.f32.mrb[25].mxu0  ;;  %v551_v61 = vpop.f32.mrb[25].mxu1 }
 0x136   :  { %v435_v62 = vpop.f32.mrb[26].mxu0  ;;  %v552_v60 = vpop.f32.mrb[26].mxu1 }
 0x137   :  { %609 = vst.msk [vmem:[%s1064_s3 + $0x18] sm:$0xff] %vm605_vm2, %v601_v57  ;;  %v581_v63 = vmax.f32 %v567_v6, %v574_v58  ;;  %v575_v0 = vmax.f32 %v435_v62, %v552_v60  ;;  %v437_v1 = vpop.f32.mrb[27].mxu0  ;;  %v554_v2 = vpop.f32.mrb[27].mxu1 }
 0x139   :  { %v595_v3 = vadd.f32 %v696_v28, %v581_v63  ;;  %v582_v7 = vmax.f32 %v568_v11, %v575_v0 }
 0x13b   :  { %v602_v8 = vmax.f32 %v595_v3, 0.0  ;;  %v596_v12 = vadd.f32 %v696_v28, %v582_v7 }
 0x13c   :  { %v440_v13 = vpop.f32.mrb[28].mxu0  ;;  %v557_v17 = vpop.f32.mrb[28].mxu1 }
 0x13d   :  { %610 = vst.msk [vmem:[%s1064_s3 + $0x20] sm:$0xff] %vm605_vm2, %v602_v8  ;;  %v603_v18 = vmax.f32 %v596_v12, 0.0  ;;  %v576_v4 = vmax.f32 %v440_v13, %v557_v17  ;;  %v442_v5 = vpop.f32.mrb[29].mxu0  ;;  %v559_v6 = vpop.f32.mrb[29].mxu1 }
 0x13e   :  { %v443_v19 = vpop.f32.mrb[30].mxu0  ;;  %v560_v20 = vpop.f32.mrb[30].mxu1 }
 0x13f   :  { %611 = vst.msk [vmem:[%s1064_s3 + $0x28] sm:$0xff] %vm605_vm2, %v603_v18  ;;  %v583_v9 = vmax.f32 %v569_v16, %v576_v4  ;;  %v444_v10 = vpop.f32.mrb[31].mxu0  ;;  %v561_v11 = vpop.f32.mrb[31].mxu1 }
 0x141   :  { %v597_v21 = vadd.f32 %v696_v28, %v583_v9 }
 0x143   :  { %v604_v22 = vmax.f32 %v597_v21, 0.0 }
 0x145   :  { %612 = vst.msk [vmem:[%s1064_s3 + $0x30] sm:$0xff] %vm605_vm2, %v604_v22 }

// kernel: simple_cnn_forward.5
= control target key start
LH: loop header
LB: loop body
LE: loop exit
PB: predicated region body
PF: predicated region fallthrough
CT: control target
= control target key end

     0   :  { %v712_v4 = vmov 0.0|0.0   ;;  %v713_v26 = vmov 1983009808   ;;  %v90_v28 = vlaneseq  ;;  %vm106_vm0 = vcmask 130048   ;;  %s1030_s0 = inlined_call_operand.vmem [shape: f32[2,400], index: 0, kind: input, shape index: {}]   ;;  %s1031_s1 = inlined_call_operand.vmem [shape: f32[400,120], index: 1, kind: input, shape index: {}]   ;;  %s1032_s2 = inlined_call_operand.vmem [shape: f32[1,120], index: 2, kind: input, shape index: {}]   ;;  %s1033_s3 = inlined_call_operand.vmem [shape: f32[120,84], index: 3, kind: input, shape index: {}]   ;;  %s1034_s4 = inlined_call_operand.vmem [shape: f32[1,84], index: 4, kind: input, shape index: {}]   ;;  %s1035_s5 = inlined_call_operand.vmem [shape: f32[84,10], index: 5, kind: input, shape index: {}]   ;;  %s1036_s6 = inlined_call_operand.vmem [shape: f32[1,10], index: 6, kind: input, shape index: {}]   ;;  %s1037_s7 = inlined_call_operand.hbm [shape: f32[2,10], index: 7, kind: output, shape index: {}]  }
   0x1   :  { %v44_v0 = vld [vmem:[%s1031_s1 + $0x80] sm:$0xff]  ;;  %v45_v1 = vld [vmem:[%s1031_s1 + $0x88] sm:$0xff]  ;;  %619 = vmatprep.subr.bf16.mxu1 %v712_v4  ;;  %v46_v10 = vld [vmem:[%s1031_s1 + $0x90] sm:$0xff]  ;;  %v88_v27 = vunpack.c.l.s4 %v713_v26 }
   0x2   :  { %v28_v2 = vld [vmem:[%s1031_s1] sm:$0xff]  ;;  %v587_v3 = vpack.c.bf16 %v45_v1, %v44_v0  ;;  %v29_v5 = vld [vmem:[%s1031_s1 + $0x8] sm:$0xff]  ;;  %v47_v11 = vld [vmem:[%s1031_s1 + $0x98] sm:$0xff]  ;;  %v91_v39 = vshrl.u32 %v90_v28, 7 }
   0x3   :  { %v60_v6 = vld [vmem:[%s1031_s1 + $0x100] sm:$0xff]  ;;  %v61_v7 = vld [vmem:[%s1031_s1 + $0x108] sm:$0xff]  ;;  %v589_v8 = vpack.c.bf16 %v29_v5, %v28_v2  ;;  %v30_v12 = vld [vmem:[%s1031_s1 + $0x10] sm:$0xff]  ;;  %v591_v13 = vpack.c.bf16 %v47_v11, %v46_v10  ;;  %v89_v38 = vunpack.c.0.s8 %v88_v27 }
   0x4   :  { %v620_v9 = vpack.c.bf16 %v61_v7, %v60_v6  ;;  %588 = vmatprep.subr.bf16.mxu0 %v587_v3  ;;  %v31_v14 = vld [vmem:[%s1031_s1 + $0x18] sm:$0xff]  ;;  %v62_v15 = vld [vmem:[%s1031_s1 + $0x110] sm:$0xff]  ;;  %v48_v19 = vld [vmem:[%s1031_s1 + $0xa0] sm:$0xff] }
   0x5   :  { %v63_v16 = vld [vmem:[%s1031_s1 + $0x118] sm:$0xff]  ;;  %590 = vmatpush3.bf16.msra.mxu0 %v589_v8  ;;  %v593_v17 = vpack.c.bf16 %v31_v14, %v30_v12  ;;  %v49_v20 = vld [vmem:[%s1031_s1 + $0xa8] sm:$0xff]  ;;  %v32_v21 = vld [vmem:[%s1031_s1 + $0x20] sm:$0xff]  ;;  %v92_v49 = vsub.s32 %v89_v38, %v91_v39 }
   0x6   :  { %621 = vmatpush1.bf16.msra.mxu1 %v620_v9  ;;  %v623_v18 = vpack.c.bf16 %v63_v16, %v62_v15  ;;  %592 = vmatprep.subr.bf16.mxu0 %v591_v13  ;;  %v595_v22 = vpack.c.bf16 %v49_v20, %v48_v19  ;;  %v33_v23 = vld [vmem:[%s1031_s1 + $0x28] sm:$0xff]  ;;  %v64_v24 = vld [vmem:[%s1031_s1 + $0x120] sm:$0xff]  ;;  %v50_v29 = vld [vmem:[%s1031_s1 + $0xb0] sm:$0xff] }
   0x7   :  { %622 = vmatprep.subr.bf16.mxu1 %v712_v4  ;;  %v65_v25 = vld [vmem:[%s1031_s1 + $0x128] sm:$0xff]  ;;  %v51_v30 = vld [vmem:[%s1031_s1 + $0xb8] sm:$0xff]  ;;  %v597_v31 = vpack.c.bf16 %v33_v23, %v32_v21  ;;  %v34_v33 = vld [vmem:[%s1031_s1 + $0x30] sm:$0xff] }
   0x8   :  { %v626_v32 = vpack.c.bf16 %v65_v25, %v64_v24  ;;  %v599_v34 = vpack.c.bf16 %v51_v30, %v50_v29  ;;  %v35_v35 = vld [vmem:[%s1031_s1 + $0x38] sm:$0xff]  ;;  %v66_v36 = vld [vmem:[%s1031_s1 + $0x130] sm:$0xff]  ;;  %v52_v40 = vld [vmem:[%s1031_s1 + $0xc0] sm:$0xff] }
   0x9   :  { %594 = vmatpush3.bf16.msra.mxu0 %v593_v17  ;;  %v67_v37 = vld [vmem:[%s1031_s1 + $0x138] sm:$0xff]  ;;  %v53_v41 = vld [vmem:[%s1031_s1 + $0xc8] sm:$0xff]  ;;  %v601_v42 = vpack.c.bf16 %v35_v35, %v34_v33  ;;  %v36_v44 = vld [vmem:[%s1031_s1 + $0x40] sm:$0xff] }
   0xa   :  { %624 = vmatpush1.bf16.msra.mxu1 %v623_v18  ;;  %596 = vmatprep.subr.bf16.mxu0 %v595_v22  ;;  %v629_v43 = vpack.c.bf16 %v67_v37, %v66_v36  ;;  %v603_v45 = vpack.c.bf16 %v53_v41, %v52_v40  ;;  %v37_v46 = vld [vmem:[%s1031_s1 + $0x48] sm:$0xff]  ;;  %v68_v47 = vld [vmem:[%s1031_s1 + $0x140] sm:$0xff]  ;;  %v54_v50 = vld [vmem:[%s1031_s1 + $0xd0] sm:$0xff] }
   0xb   :  { %625 = vmatprep.subr.bf16.mxu1 %v712_v4  ;;  %v69_v48 = vld [vmem:[%s1031_s1 + $0x148] sm:$0xff]  ;;  %v55_v51 = vld [vmem:[%s1031_s1 + $0xd8] sm:$0xff]  ;;  %v605_v52 = vpack.c.bf16 %v37_v46, %v36_v44  ;;  %v38_v54 = vld [vmem:[%s1031_s1 + $0x50] sm:$0xff] }
   0xc   :  { %v632_v53 = vpack.c.bf16 %v69_v48, %v68_v47  ;;  %v27_v55 = vld [vmem:[%s1030_s0] sm:$0xff]  ;;  %v607_v56 = vpack.c.bf16 %v55_v51, %v54_v50  ;;  %v39_v57 = vld [vmem:[%s1031_s1 + $0x58] sm:$0xff]  ;;  %v70_v58 = vld [vmem:[%s1031_s1 + $0x150] sm:$0xff] }
   0xd   :  { %598 = vmatpush3.bf16.msra.mxu0 %v597_v31  ;;  %v71_v59 = vld [vmem:[%s1031_s1 + $0x158] sm:$0xff]  ;;  %v86_v60 = vcombine.high %v27_v55, %v27_v55  ;;  %v93_v61 = vrot.slane %v27_v55, %v92_v49  ;;  %v56_v62 = vld [vmem:[%s1031_s1 + $0xe0] sm:$0xff]  ;;  %v57_v63 = vld [vmem:[%s1031_s1 + $0xe8] sm:$0xff]  ;;  %v609_v2 = vpack.c.bf16 %v39_v57, %v38_v54 }
   0xe   :  { %627 = vmatpush1.bf16.msra.mxu1 %v626_v32  ;;  %600 = vmatprep.subr.bf16.mxu0 %v599_v34  ;;  %v635_v3 = vpack.c.bf16 %v71_v59, %v70_v58  ;;  %v40_v5 = vld [vmem:[%s1031_s1 + $0x60] sm:$0xff] }
   0xf   :  { %628 = vmatprep.subr.bf16.mxu1 %v712_v4  ;;  %v101_v0 = vcombine.high %v93_v61, %v93_v61  ;;  %v100_v1 = vrot.slane %v86_v60, %v92_v49 }
  0x11   :  { %602 = vmatpush3.bf16.msra.mxu0 %v601_v42 }
  0x12   :  { %630 = vmatpush1.bf16.msra.mxu1 %v629_v43  ;;  %604 = vmatprep.subr.bf16.mxu0 %v603_v45 }
  0x13   :  { %631 = vmatprep.subr.bf16.mxu1 %v712_v4 }
  0x15   :  { %606 = vmatpush3.bf16.msra.mxu0 %v605_v52 }
  0x16   :  { %633 = vmatpush1.bf16.msra.mxu1 %v632_v53 }
  0x17   :  { %12 = vsyncpa [#allocation3], 0  ;;  %608 = vmatprep.subr.bf16.mxu0 %v607_v56  ;;  %634 = vmatprep.subr.bf16.mxu1 %v712_v4  ;;  %v611_v6 = vpack.c.bf16 %v57_v63, %v56_v62  ;;  %v41_v7 = vld [vmem:[%s1031_s1 + $0x68] sm:$0xff]  ;;  %v72_v8 = vld [vmem:[%s1031_s1 + $0x160] sm:$0xff]  ;;  %v102_v10 = vcombine.high %v100_v1, %v100_v1  ;;  %v714_v46 = vmov 0.0   ;;  %vm715_vm1 = vmmov 0  }
  0x18   :  { %v73_v9 = vld [vmem:[%s1031_s1 + $0x168] sm:$0xff]  ;;  %v58_v11 = vld [vmem:[%s1031_s1 + $0xf0] sm:$0xff]  ;;  %v59_v12 = vld [vmem:[%s1031_s1 + $0xf8] sm:$0xff]  ;;  %173 = vmatprep.mubr.f32.mxu0 %v101_v0  ;;  %v613_v13 = vpack.c.bf16 %v41_v7, %v40_v5  ;;  %vm272_vm2 = vcmask 982016   ;;  %vm369_vm3 = vcmask 1043456   ;;  %vm365_vm4 = vcmask 687104  }
  0x19   :  { %460 = vmatprep.mubr.msk.f32.mxu1 %vm106_vm0, %v102_v10  ;;  %610 = vmatpush3.bf16.msra.mxu0 %v609_v2  ;;  %v638_v14 = vpack.c.bf16 %v73_v9, %v72_v8  ;;  %v42_v15 = vld [vmem:[%s1031_s1 + $0x70] sm:$0xff]  ;;  %v615_v16 = vpack.c.bf16 %v59_v12, %v58_v11  ;;  %v43_v17 = vld [vmem:[%s1031_s1 + $0x78] sm:$0xff]  ;;  %v76_v22 = vld [vmem:[%s1031_s1 + $0x180] sm:$0xff]  ;;  %vm443_vm5 = vcmask 74752  }
  0x1a   :  { %636 = vmatpush1.bf16.msra.mxu1 %v635_v3  ;;  %612 = vmatprep.subr.bf16.mxu0 %v611_v6  ;;  %v74_v18 = vld [vmem:[%s1031_s1 + $0x170] sm:$0xff]  ;;  %v75_v19 = vld [vmem:[%s1031_s1 + $0x178] sm:$0xff]  ;;  %v617_v20 = vpack.c.bf16 %v43_v17, %v42_v15  ;;  %v77_v23 = vld [vmem:[%s1031_s1 + $0x188] sm:$0xff]  ;;  %s716_s1 = smov [#allocation2]  }
  0x1b   :  { %637 = vmatprep.subr.bf16.mxu1 %v712_v4  ;;  %v641_v21 = vpack.c.bf16 %v75_v19, %v74_v18  ;;  %v250_v24 = vld [vmem:[%s1033_s3] sm:$0xff]  ;;  %v251_v25 = vld [vmem:[%s1033_s3 + $0x8] sm:$0xff]  ;;  %v644_v26 = vpack.c.bf16 %v77_v23, %v76_v22  ;;  %v252_v28 = vld [vmem:[%s1033_s3 + $0x10] sm:$0xff]  ;;  %s451_s15 = sshll.u32 %s716_s1, 4  ;;  %s452_s15 = int_to_ptr.vmem [resolvable:$true] %s451_s15 }
  0x1c   :  { %v647_v27 = vpack.c.bf16 %v251_v25, %v250_v24  ;;  %v253_v29 = vld [vmem:[%s1033_s3 + $0x18] sm:$0xff]  ;;  %v254_v31 = vld [vmem:[%s1033_s3 + $0x20] sm:$0xff]  ;;  %v255_v32 = vld [vmem:[%s1033_s3 + $0x28] sm:$0xff]  ;;  %p693_p1 = scmp.lt.s32.totalorder %s452_s15, %s452_s15 }
  0x1d   :  { %614 = vmatpush3.bf16.msra.mxu0 %v613_v13  ;;  %v650_v30 = vpack.c.bf16 %v253_v29, %v252_v28  ;;  %v653_v33 = vpack.c.bf16 %v255_v32, %v254_v31  ;;  %v256_v34 = vld [vmem:[%s1033_s3 + $0x30] sm:$0xff]  ;;  %v257_v35 = vld [vmem:[%s1033_s3 + $0x38] sm:$0xff]  ;;  %v258_v37 = vld [vmem:[%s1033_s3 + $0x40] sm:$0xff] }
  0x1e   :  { %639 = vmatpush1.bf16.msra.mxu1 %v638_v14  ;;  %616 = vmatprep.subr.bf16.mxu0 %v615_v16  ;;  %v656_v36 = vpack.c.bf16 %v257_v35, %v256_v34  ;;  %v259_v38 = vld [vmem:[%s1033_s3 + $0x48] sm:$0xff]  ;;  %v260_v40 = vld [vmem:[%s1033_s3 + $0x50] sm:$0xff]  ;;  %v261_v41 = vld [vmem:[%s1033_s3 + $0x58] sm:$0xff] }
  0x1f   :  { %640 = vmatprep.subr.bf16.mxu1 %v712_v4  ;;  %v659_v39 = vpack.c.bf16 %v259_v38, %v258_v37  ;;  %v662_v42 = vpack.c.bf16 %v261_v41, %v260_v40  ;;  %v262_v43 = vld [vmem:[%s1033_s3 + $0x60] sm:$0xff]  ;;  %v263_v44 = vld [vmem:[%s1033_s3 + $0x68] sm:$0xff]  ;;  %v264_v47 = vld [vmem:[%s1033_s3 + $0x70] sm:$0xff] }
  0x20   :  { %v665_v45 = vpack.c.bf16 %v263_v44, %v262_v43  ;;  %v347_v48 = vld [vmem:[%s1035_s5] sm:$0xff]  ;;  %v348_v49 = vld [vmem:[%s1035_s5 + $0x8] sm:$0xff]  ;;  %v349_v50 = vld [vmem:[%s1035_s5 + $0x10] sm:$0xff] }
  0x21   :  { %618 = vmatpush3.bf16.msra.mxu0 %v617_v20  ;;  %v668_v51 = vpack.c.bf16 %v348_v49, %v347_v48  ;;  %v350_v52 = vld [vmem:[%s1035_s5 + $0x18] sm:$0xff]  ;;  %v351_v54 = vld [vmem:[%s1035_s5 + $0x20] sm:$0xff]  ;;  %v352_v55 = vld [vmem:[%s1035_s5 + $0x28] sm:$0xff] }
  0x22   :  { %642 = vmatpush1.bf16.msra.mxu1 %v641_v21  ;;  %646 = vmatprep.subr.bf16.mxu0 %v712_v4  ;;  %v671_v53 = vpack.c.bf16 %v350_v52, %v349_v50  ;;  %v674_v56 = vpack.c.bf16 %v352_v55, %v351_v54  ;;  %v353_v57 = vld [vmem:[%s1035_s5 + $0x30] sm:$0xff]  ;;  %v354_v58 = vld [vmem:[%s1035_s5 + $0x38] sm:$0xff]  ;;  %v459_v62 = vld [vmem:[%s1032_s2] ss:$0 sm:$0xff] }
  0x23   :  { %643 = vmatprep.subr.bf16.mxu1 %v712_v4  ;;  %v677_v59 = vpack.c.bf16 %v354_v58, %v353_v57  ;;  %v355_v6 = vld [vmem:[%s1035_s5 + $0x40] sm:$0xff]  ;;  %v357_v8 = vld [vmem:[%s1035_s5 + $0x50] sm:$0xf] }
  0x24   :  { %174 = vmatmul.mubr.f32.vlgmr.msra.gmra.mrb[0].mxu0 %v93_v61  ;;  %v461_v9 = vld [vmem:[%s1034_s4] ss:$0 sm:$0xff] }
  0x25   :  { %648 = vmatpush3.bf16.msra.mxu0 %v647_v27  ;;  %559 = vmatprep.mubr.msk.f32.mxu0 %vm715_vm1, %v714_v46  ;;  %v463_v14 = vld [vmem:[%s1036_s6] ss:$0 sm:$0xff] }
  0x26   :  { %645 = vmatpush1.bf16.msra.mxu1 %v644_v26  ;;  %649 = vmatprep.subr.bf16.mxu0 %v712_v4 }
  0x27   :  { %667 = vmatprep.subr.bf16.mxu1 %v712_v4 }
  0x29   :  { %244 = vmatmul.mubr.f32.vlgmr.msra.gmra.mrb[0].mxu1 %v100_v1  ;;  %651 = vmatpush3.bf16.msra.mxu0 %v650_v30 }
  0x2a   :  { %652 = vmatprep.subr.bf16.mxu0 %v712_v4  ;;  %584 = vmatprep.mubr.msk.f32.mxu1 %vm715_vm1, %v714_v46 }
  0x2b   :  { %669 = vmatpush3.bf16.msra.mxu1 %v668_v51 }
  0x2c   :  { %670 = vmatprep.subr.bf16.mxu1 %v712_v4 }
  0x2d   :  { %654 = vmatpush3.bf16.msra.mxu0 %v653_v33 }
  0x2e   :  { %655 = vmatprep.subr.bf16.mxu0 %v712_v4 }
  0x2f   :  { %672 = vmatpush3.bf16.msra.mxu1 %v671_v53 }
  0x30   :  { %673 = vmatprep.subr.bf16.mxu1 %v712_v4 }
  0x31   :  { %657 = vmatpush3.bf16.msra.mxu0 %v656_v36 }
  0x32   :  { %658 = vmatprep.subr.bf16.mxu0 %v712_v4 }
  0x33   :  { %675 = vmatpush3.bf16.msra.mxu1 %v674_v56 }
  0x34   :  { %676 = vmatprep.subr.bf16.mxu1 %v712_v4 }
  0x35   :  { %660 = vmatpush3.bf16.msra.mxu0 %v659_v39 }
  0x36   :  { %661 = vmatprep.subr.bf16.mxu0 %v712_v4 }
  0x37   :  { %678 = vmatpush3.bf16.msra.mxu1 %v677_v59 }
  0x38   :  { %679 = vmatprep.subr.bf16.mxu1 %v712_v4 }
  0x39   :  { %663 = vmatpush3.bf16.msra.mxu0 %v662_v42 }
  0x3a   :  { %664 = vmatprep.subr.bf16.mxu0 %v712_v4  ;;  %v356_v4 = vld [vmem:[%s1035_s5 + $0x48] sm:$0xff]  ;;  %s688_s5 = scalar_lea.vmem %s452_s15, 32 }
  0x3b   :  { %v680_v7 = vpack.c.bf16 %v356_v4, %v355_v6  ;;  %p689_p0 = scmp.ne.s32.totalorder %s452_s15, %s688_s5  ;;  %p694_p2 = scmp.lt.s32.totalorder %s688_s5, %s688_s5 }
  0x3d   :  { %666 = vmatpush3.bf16.msra.mxu0 %v665_v45  ;;  %681 = vmatpush3.bf16.msra.mxu1 %v680_v7  ;;  %p695_p3 = por %p694_p2, %p693_p1 }
  0x3e   :  { %557 = vmatprep.subr.mxu0 %v714_v46  ;;  %582 = vmatprep.subr.mxu1 %v714_v46 }
  0x3f   :  { %p696_p4 = pnand %p695_p3, %p689_p0 }
  0x41   :  { %558 = vmatpush3.msra.mxu0 %v264_v47  ;;  %583 = vmatpush3.msk.msra.mxu1 %vm369_vm3, %v357_v8 }
  0xf7   :  { %v498_v60 = vpop.f32.mrb[0].mxu0 }
  0xf8   :  { %v499_v61 = vpop.f32.mrb[1].mxu0 }
  0xf9   :  { %v500_v63 = vadd.f32 %v499_v61, %v498_v60 }
  0xfb   :  { %v176_v0 = vadd.f32 %v500_v63, %v459_v62 }
  0xfc   :  { %v245_v1 = vpop.f32.mrb[0].mxu1 }
  0xfd   :  { %v247_v2 = vpop.f32.mrb[1].mxu1  ;;  %v246_v3 = vadd.f32 %v245_v1, %v176_v0 }
  0xff   :  { %v249_v5 = vmax.f32 %v246_v3, 0.0 }
 0x101   :  { %560 = vmatmul.mubr.msk.f32.vlgmr.msra.gmra.mrb[2].mxu0 %vm272_vm2, %v249_v5 }
 0x1d4   :  { %v342_v10 = vpop.f32.mrb[2].mxu0 }
 0x1d5   :  { %v343_v11 = vadd.f32 %v461_v9, %v342_v10  ;;  %v561_v12 = vpop.f32.mrb[3].mxu0 }
 0x1d7   :  { %v346_v13 = vmax.f32 %v343_v11, 0.0 }
 0x1d9   :  { %585 = vmatmul.mubr.msk.f32.vlgmr.msra.gmra.mrb[2].mxu1 %vm365_vm4, %v346_v13 }
 0x2ac   :  { %v439_v15 = vpop.f32.mrb[2].mxu1 }
 0x2ad   :  { %v440_v16 = vadd.f32 %v463_v14, %v439_v15  ;;  %v586_v17 = vpop.f32.mrb[3].mxu1 }
 0x2af   :  { %444 = vst.msk [vmem:[#allocation2] sm:$0x3] %vm443_vm5, %v440_v16 }
 0x2b0   :  { %699 = shalt.err (!%p696_p4)
}
 0x2b1   :  { %s700_s17 = scalar_lea.hbm %s1037_s7, 32 }
 0x2b2   :  { %p701_p5 = scmp.ne.s32.totalorder %s1037_s7, %s700_s17  ;;  %p704_p6 = scmp.lt.u32.totalorder %s700_s17, %s1037_s7 }
 0x2b4   :  { %p706_p7 = pnand %p704_p6, %p701_p5 }
 0x2b6   :  { %709 = shalt.err (!%p706_p7)
}
 0x2b7   :  { %454 = dma.vmem_to_hbm [thread:$0]  %s452_s15, 32, %s1037_s7, [#allocation3]  }
 0x2b8   :  { %710 = dma.done.wait [#allocation3], 32  }
 0x2b9   :  { %711 = vsyncadd [#allocation3], 4294967264 }
 0x2ba   :  { %458 = vsyncpa [#allocation3], 1 }

</bundles_post_ra>
